<compile_context>
chip_gen: v7x
topology: tpu7x:2x2x1
jax: 0.10.0
libtpu: 0.0.40
codegen_flags: <defaults>
</compile_context>

<pallas_src>
import functools

import jax
import jax.numpy as jnp
from jax.experimental import pallas as pl
from jax.experimental.pallas import tpu as pltpu  # noqa: F401  (TPU backend)

NEGATIVE_SLOPE = 0.2  # DGL GATConv default
MASK_VALUE = -1e30


# ------------------------------ fused kernel --------------------------------

def _gat_forward_kernel(adj1_ref, adj2_ref, x_ref, p_ref, o_ref, *,
                        num_heads, head_dim, layout):
    H, D = num_heads, head_dim

    def get(name):
        r0, r, c = layout[name]          # static python ints -> static slices
        return p_ref[r0:r0 + r, 0:c]

    def gat_layer(adj_ref, x, prefix):
        """One GATConv + fused module-level ReLU, all heads batched."""
        n = x.shape[0]
        feat = jnp.dot(x, get(prefix + "_fc_w"),
                       preferred_element_type=jnp.float32)           # (N, H*D)
        # el/er for all heads from one matmul against packed (H*D, 2H) weights.
        scores = jnp.dot(feat, get(prefix + "_attn_lr_t"),
                         preferred_element_type=jnp.float32)         # (N, 2H)
        el = scores[:, :H].T                                         # (H, Ns)
        er = scores[:, H:2 * H]                                      # (Nd, H)
        # e[d, h, s] = er[d, h] + el[h, s]
        e = er[:, :, None] + el[None, :, :]                          # (Nd,H,Ns)
        e = jnp.where(e >= 0.0, e, NEGATIVE_SLOPE * e)               # leaky relu
        mask = adj_ref[...] != 0                                     # (Nd, Ns)
        e = jnp.where(mask[:, None, :], e, MASK_VALUE)
        # batched softmax over src (one XLU/EUP chain for all heads)
        m = jnp.max(e, axis=-1, keepdims=True)
        p = jnp.exp(e - m)                      # masked entries underflow to 0
        s = jnp.sum(p, axis=-1, keepdims=True)
        alpha = p * pl.reciprocal(s, approx=True)                    # (Nd,H,Ns)
        # single MXU aggregation via block-diagonal features:
        #   alpha_flat[d, h*Ns+s] * feat_bd[h*Ns+s, h*D+k]  ->  (Nd, H*D)
        alpha_flat = alpha.reshape(n, H * n)                         # (Nd,H*Ns)
        feat_bd = jnp.concatenate([feat] * H, axis=0) * get("bd_mask")
        agg = jnp.dot(alpha_flat, feat_bd,
                      preferred_element_type=jnp.float32)            # (Nd, H*D)
        # GATConv bias + module-level ReLU, fused.
        return jnp.maximum(agg + get(prefix + "_bias"), 0.0)

    # embed: Linear(in_feats, hid)
    h = jnp.dot(x_ref[...], get("embed_w"),
                preferred_element_type=jnp.float32) + get("embed_b")
    # relu(GATConv1) -> relu(GATConv2)
    h = gat_layer(adj1_ref, h, "c1")
    h = gat_layer(adj2_ref, h, "c2")
    # predict: Linear(H*D, D) -> Linear(D, 1) -> Sigmoid
    h = jnp.dot(h, get("p1_w"), preferred_element_type=jnp.float32) + get("p1_b")
    h = jnp.dot(h, get("p2_w"), preferred_element_type=jnp.float32) + get("p2_b")
    o_ref[...] = jax.nn.sigmoid(h).astype(o_ref.dtype)


def make_gat_forward(layout, n, num_heads, hid_feats):
    kernel = functools.partial(_gat_forward_kernel, num_heads=num_heads,
                               head_dim=hid_feats, layout=layout)
    call = pl.pallas_call(
        kernel,
        out_shape=jax.ShapeDtypeStruct((n, 1), jnp.float32),
    )

    @jax.jit
    def forward(param_slab, adj1, adj2, x):
        return call(adj1, adj2, x, param_slab)

    return forward


# ------------------------------ params & packing -----------------------------

def init_params(key, in_feats, hid_feats, num_heads):
    H, D = num_heads, hid_feats
    ks = jax.random.split(key, 12)

    def w(k, shape, scale=0.1):
        return (scale * jax.random.normal(k, shape)).astype(jnp.float32)

    return {
        "embed_w": w(ks[0], (in_feats, D)),       # Linear(in, hid), pre-transposed
        "embed_b": w(ks[1], (1, D)),
        "c1_fc_w": w(ks[2], (D, H * D)),          # GATConv fc (bias=False)
        "c1_attn_l": w(ks[3], (H, D)),
        "c1_attn_r": w(ks[4], (H, D)),
        "c1_bias": w(ks[5], (H, D)).reshape(1, H * D),
        "c2_fc_w": w(ks[6], (H * D, H * D)),
        "c2_attn_l": w(ks[7], (H, D)),
        "c2_attn_r": w(ks[8], (H, D)),
        "c2_bias": w(ks[9], (H, D)).reshape(1, H * D),
        "p1_w": w(ks[10], (H * D, D)),            # predict Linear(H*D, D)
        "p1_b": jnp.zeros((1, D), jnp.float32),
        "p2_w": w(ks[11], (D, 1)),                # predict Linear(D, 1) + Sigmoid
        "p2_b": jnp.zeros((1, 1), jnp.float32),
    }


def build_packed_arrays(p, num_heads, hid_feats, n):
    """Derive kernel-layout weights (packed attn, block-diag selector)."""
    H, D = num_heads, hid_feats

    def attn_lr_t(attn_l, attn_r):
        # (H*D, 2H): col h holds attn_l[h] in its head block, col H+h attn_r[h].
        t = jnp.zeros((H * D, 2 * H), jnp.float32)
        for h in range(H):
            t = t.at[h * D:(h + 1) * D, h].set(attn_l[h])
            t = t.at[h * D:(h + 1) * D, H + h].set(attn_r[h])
        return t

    row_head = jnp.arange(H * n) // n
    col_head = jnp.arange(H * D) // D
    bd_mask = (row_head[:, None] == col_head[None, :]).astype(jnp.float32)

    return {
        "embed_w": p["embed_w"], "embed_b": p["embed_b"],
        "c1_fc_w": p["c1_fc_w"],
        "c1_attn_lr_t": attn_lr_t(p["c1_attn_l"], p["c1_attn_r"]),
        "c1_bias": p["c1_bias"],
        "c2_fc_w": p["c2_fc_w"],
        "c2_attn_lr_t": attn_lr_t(p["c2_attn_l"], p["c2_attn_r"]),
        "c2_bias": p["c2_bias"],
        "p1_w": p["p1_w"], "p1_b": p["p1_b"],
        "p2_w": p["p2_w"], "p2_b": p["p2_b"],
        "bd_mask": bd_mask,
    }


def pack_params(arrays, n_cols=128):
    """Pack small parameter arrays into one (rows, 128) f32 slab.

    Each array gets an 8-row-aligned band starting at column 0; the returned
    layout dict maps name -> (row_start, rows, cols) for static in-kernel slices.
    """
    layout, cursor = {}, 0
    for name, a in arrays.items():
        r, c = a.shape
        assert c <= n_cols, name
        layout[name] = (cursor, r, c)
        cursor += ((r + 7) // 8) * 8
    cursor = ((cursor + 7) // 8) * 8
    slab = jnp.zeros((cursor, n_cols), jnp.float32)
    for name, a in arrays.items():
        r0, r, c = layout[name]
        slab = slab.at[r0:r0 + r, 0:c].set(a.astype(jnp.float32))
    return slab, layout


# ------------------------------ pure-JAX reference ---------------------------

def gat_forward_ref(p, adj1, adj2, x, num_heads, hid_feats):
    H, D = num_heads, hid_feats

    def layer(adj, h, fc_w, attn_l, attn_r, bias_row):
        feat = h @ fc_w
        mask = adj != 0
        outs = []
        for hd in range(H):
            f = feat[:, hd * D:(hd + 1) * D]
            el = f @ attn_l[hd]                    # (N_src,)
            er = f @ attn_r[hd]                    # (N_dst,)
            e = er[:, None] + el[None, :]
            e = jnp.where(e >= 0.0, e, NEGATIVE_SLOPE * e)
            e = jnp.where(mask, e, -jnp.inf)
            a = jax.nn.softmax(e, axis=1)
            outs.append(a @ f)
        return jnp.maximum(jnp.concatenate(outs, axis=-1) + bias_row, 0.0)

    h = x @ p["embed_w"] + p["embed_b"]
    h = layer(adj1, h, p["c1_fc_w"], p["c1_attn_l"], p["c1_attn_r"], p["c1_bias"])
    h = layer(adj2, h, p["c2_fc_w"], p["c2_attn_l"], p["c2_attn_r"], p["c2_bias"])
    h = h @ p["p1_w"] + p["p1_b"]
    h = h @ p["p2_w"] + p["p2_b"]
    return jax.nn.sigmoid(h)


# ----------------------------------- main ------------------------------------

if __name__ == "__main__":
    IN_FEATS, HID_FEATS, NUM_HEADS, N = 8, 16, 4, 16

    key = jax.random.PRNGKey(0)
    k_x, k_a1, k_a2, k_p = jax.random.split(key, 4)

    x = jax.random.normal(k_x, (N, IN_FEATS), dtype=jnp.float32)

    def make_adj(k):  # int8 binary adjacency with self loops
        a = jax.random.uniform(k, (N, N)) < 0.3
        a = jnp.logical_or(a, jnp.eye(N, dtype=jnp.bool_))
        return a.astype(jnp.int8)

    adj1, adj2 = make_adj(k_a1), make_adj(k_a2)

    params = init_params(k_p, IN_FEATS, HID_FEATS, NUM_HEADS)
    slab, layout = pack_params(build_packed_arrays(params, NUM_HEADS, HID_FEATS, N))

    forward = make_gat_forward(layout, N, NUM_HEADS, HID_FEATS)
    out = jax.block_until_ready(forward(slab, adj1, adj2, x))

    assert out.shape == (N, 1)
    assert bool(jnp.all(jnp.isfinite(out)))

    ref = gat_forward_ref(params, adj1, adj2, x, NUM_HEADS, HID_FEATS)
    max_err = float(jnp.max(jnp.abs(out - ref)))
    assert max_err < 1e-2, f"mismatch vs reference: {max_err}"

    print("KERNEL_OK")
</pallas_src>

<mosaic_0001>
module attributes {stable_mosaic.version = 11 : i64} {
  func.func @_gat_forward_kernel(%arg0: memref<16x16xi8, #tpu.memory_space<vmem>>, %arg1: memref<16x16xi8, #tpu.memory_space<vmem>>, %arg2: memref<16x8xf32, #tpu.memory_space<vmem>>, %arg3: memref<400x128xf32, #tpu.memory_space<vmem>>, %arg4: memref<16x1xf32, #tpu.memory_space<vmem>>) attributes {dimension_semantics = [], scalar_prefetch = 0 : i64, scratch_operands = 0 : i64, tpu.core_type = #tpu.core_type<tc>} {
    %c0 = arith.constant 0 : index
    %c0_0 = arith.constant 0 : index
    %0 = vector.load %arg2[%c0, %c0_0] : memref<16x8xf32, #tpu.memory_space<vmem>>, vector<16x8xf32>
    %c0_1 = arith.constant 0 : index
    %c0_2 = arith.constant 0 : index
    %1 = vector.load %arg3[%c0_1, %c0_2] : memref<400x128xf32, #tpu.memory_space<vmem>>, vector<8x16xf32>
    %cst = arith.constant dense<0.000000e+00> : vector<16x16xf32>
    %2 = tpu.matmul %0, %1, %cst {dimension_numbers = #tpu.dot_dimension_numbers<[1], [0], [0], [1], [0, 0, 1, 1], [], []>} : vector<16x8xf32>, vector<8x16xf32>, vector<16x16xf32> -> vector<16x16xf32>
    %c8 = arith.constant 8 : index
    %c0_3 = arith.constant 0 : index
    %3 = vector.load %arg3[%c8, %c0_3] : memref<400x128xf32, #tpu.memory_space<vmem>>, vector<1x16xf32>
    %4 = vector.broadcast %3 : vector<1x16xf32> to vector<16x16xf32>
    %5 = arith.addf %2, %4 : vector<16x16xf32>
    %c16 = arith.constant 16 : index
    %c0_4 = arith.constant 0 : index
    %6 = vector.load %arg3[%c16, %c0_4] : memref<400x128xf32, #tpu.memory_space<vmem>>, vector<16x64xf32>
    %cst_5 = arith.constant dense<0.000000e+00> : vector<16x64xf32>
    %7 = tpu.matmul %5, %6, %cst_5 {dimension_numbers = #tpu.dot_dimension_numbers<[1], [0], [0], [1], [0, 0, 1, 1], [], []>} : vector<16x16xf32>, vector<16x64xf32>, vector<16x64xf32> -> vector<16x64xf32>
    %c32 = arith.constant 32 : index
    %c0_6 = arith.constant 0 : index
    %8 = vector.load %arg3[%c32, %c0_6] : memref<400x128xf32, #tpu.memory_space<vmem>>, vector<64x8xf32>
    %cst_7 = arith.constant dense<0.000000e+00> : vector<16x8xf32>
    %9 = tpu.matmul %7, %8, %cst_7 {dimension_numbers = #tpu.dot_dimension_numbers<[1], [0], [0], [1], [0, 0, 1, 1], [], []>} : vector<16x64xf32>, vector<64x8xf32>, vector<16x8xf32> -> vector<16x8xf32>
    %10 = vector.extract_strided_slice %9 {offsets = [0, 0], sizes = [16, 4], strides = [1, 1]} : vector<16x8xf32> to vector<16x4xf32>
    %11 = tpu.transpose %10, [1, 0] : vector<16x4xf32> -> vector<4x16xf32>
    %12 = vector.extract_strided_slice %9 {offsets = [0, 4], sizes = [16, 4], strides = [1, 1]} : vector<16x8xf32> to vector<16x4xf32>
    %13 = vector.shape_cast %12 : vector<16x4xf32> to vector<16x4x1xf32>
    %14 = vector.shape_cast %11 : vector<4x16xf32> to vector<1x4x16xf32>
    %15 = vector.broadcast %13 : vector<16x4x1xf32> to vector<16x4x16xf32>
    %16 = vector.broadcast %14 : vector<1x4x16xf32> to vector<16x4x16xf32>
    %17 = arith.addf %15, %16 : vector<16x4x16xf32>
    %cst_8 = arith.constant 0.000000e+00 : f32
    %18 = vector.broadcast %cst_8 : f32 to vector<16x4x16xf32>
    %19 = arith.cmpf oge, %17, %18 : vector<16x4x16xf32>
    %cst_9 = arith.constant 2.000000e-01 : f32
    %20 = vector.broadcast %cst_9 : f32 to vector<16x4x16xf32>
    %21 = arith.mulf %20, %17 : vector<16x4x16xf32>
    %22 = arith.select %19, %17, %21 : vector<16x4x16xi1>, vector<16x4x16xf32>
    %c0_10 = arith.constant 0 : index
    %c0_11 = arith.constant 0 : index
    %23 = vector.load %arg0[%c0_10, %c0_11] : memref<16x16xi8, #tpu.memory_space<vmem>>, vector<16x16xi8>
    %c0_i8 = arith.constant 0 : i8
    %24 = vector.broadcast %c0_i8 : i8 to vector<16x16xi8>
    %25 = arith.cmpi ne, %23, %24 : vector<16x16xi8>
    %26 = vector.shape_cast %25 : vector<16x16xi1> to vector<16x1x16xi1>
    %cst_12 = arith.constant -1.000000e+30 : f32
    %27 = vector.shape_cast %26 : vector<16x1x16xi1> to vector<16x1x16xi1>
    %28 = vector.broadcast %27 : vector<16x1x16xi1> to vector<16x4x16xi1>
    %29 = vector.broadcast %cst_12 : f32 to vector<16x4x16xf32>
    %30 = arith.select %28, %22, %29 : vector<16x4x16xi1>, vector<16x4x16xf32>
    %cst_13 = arith.constant dense<0xFF800000> : vector<16x4xf32>
    %31 = vector.multi_reduction <maximumf>, %30, %cst_13 [2] : vector<16x4x16xf32> to vector<16x4xf32>
    %32 = vector.shape_cast %31 : vector<16x4xf32> to vector<16x4x1xf32>
    %33 = vector.broadcast %32 : vector<16x4x1xf32> to vector<16x4x16xf32>
    %34 = arith.subf %30, %33 : vector<16x4x16xf32>
    %35 = math.exp %34 : vector<16x4x16xf32>
    %cst_14 = arith.constant dense<0.000000e+00> : vector<16x4xf32>
    %36 = vector.multi_reduction <add>, %35, %cst_14 [2] : vector<16x4x16xf32> to vector<16x4xf32>
    %37 = vector.shape_cast %36 : vector<16x4xf32> to vector<16x4x1xf32>
    %38 = tpu.reciprocal %37 {approx = true} : vector<16x4x1xf32> -> vector<16x4x1xf32>
    %39 = vector.broadcast %38 : vector<16x4x1xf32> to vector<16x4x16xf32>
    %40 = arith.mulf %35, %39 : vector<16x4x16xf32>
    %41 = vector.shape_cast %40 : vector<16x4x16xf32> to vector<16x64xf32>
    %42 = tpu.concatenate %7, %7, %7, %7 in 0 : vector<16x64xf32>, vector<16x64xf32>, vector<16x64xf32>, vector<16x64xf32> -> vector<64x64xf32>
    %c336 = arith.constant 336 : index
    %c0_15 = arith.constant 0 : index
    %43 = vector.load %arg3[%c336, %c0_15] : memref<400x128xf32, #tpu.memory_space<vmem>>, vector<64x64xf32>
    %44 = arith.mulf %42, %43 : vector<64x64xf32>
    %cst_16 = arith.constant dense<0.000000e+00> : vector<16x64xf32>
    %45 = tpu.matmul %41, %44, %cst_16 {dimension_numbers = #tpu.dot_dimension_numbers<[1], [0], [0], [1], [0, 0, 1, 1], [], []>} : vector<16x64xf32>, vector<64x64xf32>, vector<16x64xf32> -> vector<16x64xf32>
    %c96 = arith.constant 96 : index
    %c0_17 = arith.constant 0 : index
    %46 = vector.load %arg3[%c96, %c0_17] : memref<400x128xf32, #tpu.memory_space<vmem>>, vector<1x64xf32>
    %47 = vector.broadcast %46 : vector<1x64xf32> to vector<16x64xf32>
    %48 = arith.addf %45, %47 : vector<16x64xf32>
    %cst_18 = arith.constant 0.000000e+00 : f32
    %49 = vector.broadcast %cst_18 : f32 to vector<16x64xf32>
    %50 = arith.maximumf %48, %49 : vector<16x64xf32>
    %c104 = arith.constant 104 : index
    %c0_19 = arith.constant 0 : index
    %51 = vector.load %arg3[%c104, %c0_19] : memref<400x128xf32, #tpu.memory_space<vmem>>, vector<64x64xf32>
    %cst_20 = arith.constant dense<0.000000e+00> : vector<16x64xf32>
    %52 = tpu.matmul %50, %51, %cst_20 {dimension_numbers = #tpu.dot_dimension_numbers<[1], [0], [0], [1], [0, 0, 1, 1], [], []>} : vector<16x64xf32>, vector<64x64xf32>, vector<16x64xf32> -> vector<16x64xf32>
    %c168 = arith.constant 168 : index
    %c0_21 = arith.constant 0 : index
    %53 = vector.load %arg3[%c168, %c0_21] : memref<400x128xf32, #tpu.memory_space<vmem>>, vector<64x8xf32>
    %cst_22 = arith.constant dense<0.000000e+00> : vector<16x8xf32>
    %54 = tpu.matmul %52, %53, %cst_22 {dimension_numbers = #tpu.dot_dimension_numbers<[1], [0], [0], [1], [0, 0, 1, 1], [], []>} : vector<16x64xf32>, vector<64x8xf32>, vector<16x8xf32> -> vector<16x8xf32>
    %55 = vector.extract_strided_slice %54 {offsets = [0, 0], sizes = [16, 4], strides = [1, 1]} : vector<16x8xf32> to vector<16x4xf32>
    %56 = tpu.transpose %55, [1, 0] : vector<16x4xf32> -> vector<4x16xf32>
    %57 = vector.extract_strided_slice %54 {offsets = [0, 4], sizes = [16, 4], strides = [1, 1]} : vector<16x8xf32> to vector<16x4xf32>
    %58 = vector.shape_cast %57 : vector<16x4xf32> to vector<16x4x1xf32>
    %59 = vector.shape_cast %56 : vector<4x16xf32> to vector<1x4x16xf32>
    %60 = vector.broadcast %58 : vector<16x4x1xf32> to vector<16x4x16xf32>
    %61 = vector.broadcast %59 : vector<1x4x16xf32> to vector<16x4x16xf32>
    %62 = arith.addf %60, %61 : vector<16x4x16xf32>
    %cst_23 = arith.constant 0.000000e+00 : f32
    %63 = vector.broadcast %cst_23 : f32 to vector<16x4x16xf32>
    %64 = arith.cmpf oge, %62, %63 : vector<16x4x16xf32>
    %cst_24 = arith.constant 2.000000e-01 : f32
    %65 = vector.broadcast %cst_24 : f32 to vector<16x4x16xf32>
    %66 = arith.mulf %65, %62 : vector<16x4x16xf32>
    %67 = arith.select %64, %62, %66 : vector<16x4x16xi1>, vector<16x4x16xf32>
    %c0_25 = arith.constant 0 : index
    %c0_26 = arith.constant 0 : index
    %68 = vector.load %arg1[%c0_25, %c0_26] : memref<16x16xi8, #tpu.memory_space<vmem>>, vector<16x16xi8>
    %c0_i8_27 = arith.constant 0 : i8
    %69 = vector.broadcast %c0_i8_27 : i8 to vector<16x16xi8>
    %70 = arith.cmpi ne, %68, %69 : vector<16x16xi8>
    %71 = vector.shape_cast %70 : vector<16x16xi1> to vector<16x1x16xi1>
    %cst_28 = arith.constant -1.000000e+30 : f32
    %72 = vector.shape_cast %71 : vector<16x1x16xi1> to vector<16x1x16xi1>
    %73 = vector.broadcast %72 : vector<16x1x16xi1> to vector<16x4x16xi1>
    %74 = vector.broadcast %cst_28 : f32 to vector<16x4x16xf32>
    %75 = arith.select %73, %67, %74 : vector<16x4x16xi1>, vector<16x4x16xf32>
    %cst_29 = arith.constant dense<0xFF800000> : vector<16x4xf32>
    %76 = vector.multi_reduction <maximumf>, %75, %cst_29 [2] : vector<16x4x16xf32> to vector<16x4xf32>
    %77 = vector.shape_cast %76 : vector<16x4xf32> to vector<16x4x1xf32>
    %78 = vector.broadcast %77 : vector<16x4x1xf32> to vector<16x4x16xf32>
    %79 = arith.subf %75, %78 : vector<16x4x16xf32>
    %80 = math.exp %79 : vector<16x4x16xf32>
    %cst_30 = arith.constant dense<0.000000e+00> : vector<16x4xf32>
    %81 = vector.multi_reduction <add>, %80, %cst_30 [2] : vector<16x4x16xf32> to vector<16x4xf32>
    %82 = vector.shape_cast %81 : vector<16x4xf32> to vector<16x4x1xf32>
    %83 = tpu.reciprocal %82 {approx = true} : vector<16x4x1xf32> -> vector<16x4x1xf32>
    %84 = vector.broadcast %83 : vector<16x4x1xf32> to vector<16x4x16xf32>
    %85 = arith.mulf %80, %84 : vector<16x4x16xf32>
    %86 = vector.shape_cast %85 : vector<16x4x16xf32> to vector<16x64xf32>
    %87 = tpu.concatenate %52, %52, %52, %52 in 0 : vector<16x64xf32>, vector<16x64xf32>, vector<16x64xf32>, vector<16x64xf32> -> vector<64x64xf32>
    %c336_31 = arith.constant 336 : index
    %c0_32 = arith.constant 0 : index
    %88 = vector.load %arg3[%c336_31, %c0_32] : memref<400x128xf32, #tpu.memory_space<vmem>>, vector<64x64xf32>
    %89 = arith.mulf %87, %88 : vector<64x64xf32>
    %cst_33 = arith.constant dense<0.000000e+00> : vector<16x64xf32>
    %90 = tpu.matmul %86, %89, %cst_33 {dimension_numbers = #tpu.dot_dimension_numbers<[1], [0], [0], [1], [0, 0, 1, 1], [], []>} : vector<16x64xf32>, vector<64x64xf32>, vector<16x64xf32> -> vector<16x64xf32>
    %c232 = arith.constant 232 : index
    %c0_34 = arith.constant 0 : index
    %91 = vector.load %arg3[%c232, %c0_34] : memref<400x128xf32, #tpu.memory_space<vmem>>, vector<1x64xf32>
    %92 = vector.broadcast %91 : vector<1x64xf32> to vector<16x64xf32>
    %93 = arith.addf %90, %92 : vector<16x64xf32>
    %cst_35 = arith.constant 0.000000e+00 : f32
    %94 = vector.broadcast %cst_35 : f32 to vector<16x64xf32>
    %95 = arith.maximumf %93, %94 : vector<16x64xf32>
    %c240 = arith.constant 240 : index
    %c0_36 = arith.constant 0 : index
    %96 = vector.load %arg3[%c240, %c0_36] : memref<400x128xf32, #tpu.memory_space<vmem>>, vector<64x16xf32>
    %cst_37 = arith.constant dense<0.000000e+00> : vector<16x16xf32>
    %97 = tpu.matmul %95, %96, %cst_37 {dimension_numbers = #tpu.dot_dimension_numbers<[1], [0], [0], [1], [0, 0, 1, 1], [], []>} : vector<16x64xf32>, vector<64x16xf32>, vector<16x16xf32> -> vector<16x16xf32>
    %c304 = arith.constant 304 : index
    %c0_38 = arith.constant 0 : index
    %98 = vector.load %arg3[%c304, %c0_38] : memref<400x128xf32, #tpu.memory_space<vmem>>, vector<1x16xf32>
    %99 = vector.broadcast %98 : vector<1x16xf32> to vector<16x16xf32>
    %100 = arith.addf %97, %99 : vector<16x16xf32>
    %c312 = arith.constant 312 : index
    %c0_39 = arith.constant 0 : index
    %101 = vector.load %arg3[%c312, %c0_39] : memref<400x128xf32, #tpu.memory_space<vmem>>, vector<16x1xf32>
    %cst_40 = arith.constant dense<0.000000e+00> : vector<16x1xf32>
    %102 = tpu.matmul %100, %101, %cst_40 {dimension_numbers = #tpu.dot_dimension_numbers<[1], [0], [0], [1], [0, 0, 1, 1], [], []>} : vector<16x16xf32>, vector<16x1xf32>, vector<16x1xf32> -> vector<16x1xf32>
    %c328 = arith.constant 328 : index
    %c0_41 = arith.constant 0 : index
    %103 = vector.load %arg3[%c328, %c0_41] : memref<400x128xf32, #tpu.memory_space<vmem>>, vector<1x1xf32>
    %104 = vector.broadcast %103 : vector<1x1xf32> to vector<16x1xf32>
    %105 = arith.addf %102, %104 : vector<16x1xf32>
    %106 = arith.negf %105 : vector<16x1xf32>
    %107 = math.exp %106 : vector<16x1xf32>
    %cst_42 = arith.constant 1.000000e+00 : f32
    %108 = vector.broadcast %cst_42 : f32 to vector<16x1xf32>
    %109 = arith.addf %108, %107 : vector<16x1xf32>
    %110 = arith.divf %108, %109 : vector<16x1xf32>
    %c0_43 = arith.constant 0 : index
    %c0_44 = arith.constant 0 : index
    %111 = vector.load %arg4[%c0_43, %c0_44] : memref<16x1xf32, #tpu.memory_space<vmem>>, vector<16x1xf32>
    tpu.vector_store %arg4[%c0_43, %c0_44], %110 {strides = array<i32>} : memref<16x1xf32, #tpu.memory_space<vmem>>, vector<16x1xf32>,
    return
  }
}

</mosaic_0001>

<bundles_post_ra>
// kernel: forward.1
= control target key start
LH: loop header
LB: loop body
LE: loop exit
PB: predicated region body
PF: predicated region fallthrough
CT: control target
= control target key end

     0   :  { %9 = vsyncpa [#allocation3], 0  ;;  %s3216_s15 = smov [#allocation2]   ;;  %s4332_s0 = inlined_call_operand.vmem [shape: s8[16,16], index: 0, kind: input, shape index: {}]   ;;  %s4333_s1 = inlined_call_operand.vmem [shape: s8[16,16], index: 1, kind: input, shape index: {}]   ;;  %s4334_s2 = inlined_call_operand.vmem [shape: f32[16,8], index: 2, kind: input, shape index: {}]   ;;  %s4335_s3 = inlined_call_operand.hbm [shape: f32[400,128], index: 3, kind: input, shape index: {}]   ;;  %s4336_s4 = inlined_call_operand.vmem [shape: f32[16,1], index: 4, kind: output, shape index: {}]  }
   0x1   :  { %s21_s16 = sshll.u32 %s3216_s15, 4  ;;  %s3192_s19 = scalar_lea.hbm %s4335_s3, 6400  ;;  %s22_s16 = int_to_ptr.vmem [resolvable:$true] %s21_s16 }
   0x2   :  { %p3193_p0 = scmp.ne.s32.totalorder %s4335_s3, %s3192_s19  ;;  %p3196_p1 = scmp.lt.u32.totalorder %s3192_s19, %s4335_s3 }
   0x4   :  { %p3198_p2 = pnand %p3196_p1, %p3193_p0 }
   0x6   :  { %3201 = shalt.err (!%p3198_p2)
}
   0x7   :  { %s3202_s24 = scalar_lea.vmem %s22_s16, 6400  ;;  %p3207_p4 = scmp.lt.s32.totalorder %s22_s16, %s22_s16 }
   0x8   :  { %p3203_p3 = scmp.ne.s32.totalorder %s22_s16, %s3202_s24  ;;  %p3208_p5 = scmp.lt.s32.totalorder %s3202_s24, %s3202_s24 }
   0xa   :  { %p3209_p6 = por %p3208_p5, %p3207_p4 }
   0xc   :  { %p3210_p7 = pnand %p3209_p6, %p3203_p3 }
   0xe   :  { %3213 = shalt.err (!%p3210_p7)
}
   0xf   :  { %s3217_s25 = smov 128   ;;  %s3218_s26 = smov 8  }
  0x10   :  { %27 = dma.hbm_to_vmem [thread:$0]  %s4335_s3, 6400, %s22_s16, [#allocation3], %s3217_s25, %s3217_s25, %s3218_s26  }
  0x11   :  { %3214 = dma.done.wait [#allocation3], 6400  }
  0x12   :  { %3215 = vsyncadd [#allocation3], 4294960896  ;;  %vm41_vm0 = vcmask 64512   ;;  %v35_v0 = vld [vmem:[#allocation2] sm:$0xff]  ;;  %v34_v2 = vld [vmem:[%s4334_s2 + $0x8] sm:$0xff]  ;;  %vm4338_vm1 = vcmask 130048   ;;  %v329_v45 = vlaneseq }
  0x13   :  { %v33_v1 = vld [vmem:[%s4334_s2] sm:$0xff]  ;;  %2800 = vmatprep.subr.mxu0 %v35_v0  ;;  %v123_v3 = vld [vmem:[#allocation2 + $0x10] sm:$0xff]  ;;  %v124_v4 = vld [vmem:[#allocation2 + $0x18] sm:$0xff]  ;;  %vm4337_vm2 = vcmask 523264   ;;  %s3224_s9 = smov 16   ;;  %s3225_s10 = smov 48  }
  0x14   :  { %2802 = vmatprep.mubr.msk.f32.mxu0 %vm41_vm0, %v33_v1  ;;  %2801 = vmatpush3.msra.mxu0 %v35_v0  ;;  %v2933_v5 = vpack.c.bf16 %v124_v4, %v123_v3  ;;  %v207_v6 = vld [vmem:[#allocation2 + $0x20] sm:$0xff]  ;;  %v208_v7 = vld [vmem:[#allocation2 + $0x28] sm:$0xff]  ;;  %v209_v8 = vld [vmem:[#allocation2 + $0x30] sm:$0xff]  ;;  %v3273_v46 = vshrl.u32 %v329_v45, 7 }
  0x15   :  { %2803 = vmatmul.mubr.msk.f32.vlgmr.msra.gmra.mrb[0].mxu0 %vm41_vm0, %v34_v2  ;;  %v2937_v9 = vpack.c.bf16 %v208_v7, %v207_v6  ;;  %v210_v10 = vld [vmem:[#allocation2 + $0x38] sm:$0xff]  ;;  %v211_v12 = vld [vmem:[#allocation2 + $0x40] sm:$0xff]  ;;  %v212_v13 = vld [vmem:[#allocation2 + $0x48] sm:$0xff] }
  0x16   :  { %2934 = vmatprep.subr.bf16.mxu1 %v2933_v5  ;;  %v2941_v11 = vpack.c.bf16 %v210_v10, %v209_v8  ;;  %v2945_v14 = vpack.c.bf16 %v212_v13, %v211_v12  ;;  %v213_v15 = vld [vmem:[#allocation2 + $0x50] sm:$0xff]  ;;  %v214_v16 = vld [vmem:[#allocation2 + $0x58] sm:$0xff]  ;;  %v2704_v18 = vld [vmem:[#allocation2 + $0x8] ss:$0 sm:$0xff]  ;;  %v3276_v47 = vsub.s32 0, %v3273_v46  ;;  %v3279_v48 = vsub.s32 1, %v3273_v46 }
  0x17   :  { %2936 = vmatpush3.bf16.msra.mxu1 %v2933_v5  ;;  %2938 = vmatprep.subr.bf16.mxu0 %v2937_v9  ;;  %v2949_v17 = vpack.c.bf16 %v214_v16, %v213_v15  ;;  %v1213_v23 = vld [vmem:[#allocation2 + $0x158] sm:$0xff]  ;;  %v1215_v24 = vld [vmem:[#allocation2 + $0x168] sm:$0xff]  ;;  %v1212_v25 = vld [vmem:[#allocation2 + $0x150] sm:$0xff]  ;;  %v3284_v53 = vsub.s32 3, %v3273_v46  ;;  %v3287_v54 = vsub.s32 2, %v3273_v46  ;;  %v3292_v57 = vsub.s32 5, %v3273_v46 }
  0x18   :  { %2940 = vmatpush3.bf16.msra.mxu0 %v2937_v9  ;;  %v1217_v26 = vld [vmem:[#allocation2 + $0x178] sm:$0xff]  ;;  %v1219_v27 = vld [vmem:[#allocation2 + $0x188] sm:$0xff]  ;;  %v1214_v28 = vld [vmem:[#allocation2 + $0x160] sm:$0xff]  ;;  %v3295_v58 = vsub.s32 4, %v3273_v46  ;;  %v3300_v61 = vsub.s32 6, %v3273_v46  ;;  %v3309_v4 = vsub.s32 7, %v3273_v46 }
  0x19   :  { %2942 = vmatprep.subr.bf16.mxu0 %v2941_v11  ;;  %v1216_v29 = vld [vmem:[#allocation2 + $0x170] sm:$0xff]  ;;  %v1218_v30 = vld [vmem:[#allocation2 + $0x180] sm:$0xff]  ;;  %v3219_v9 = vmov 1966171168  }
  0x1a   :  { %v528_v10 = vunpack.c.l.s4 %v3219_v9 }
  0x1c   :  { %2944 = vmatpush3.bf16.msra.mxu0 %v2941_v11  ;;  %v522_v11 = vld [vmem:[%s4332_s0 + $0x2] sm:$0x3]  ;;  %v529_v12 = vunpack.c.0.s8 %v528_v10 }
  0x1d   :  { %2946 = vmatprep.subr.bf16.mxu0 %v2945_v14  ;;  %vm524_vm3 = vnez %v522_v11 }
  0x1e   :  { %v3319_v13 = vsub.s32 %v529_v12, %v3273_v46 }
  0x20   :  { %2948 = vmatpush3.bf16.msra.mxu0 %v2945_v14  ;;  %v3220_v14 = vmov 0  }
  0x21   :  { %2950 = vmatprep.subr.bf16.mxu0 %v2949_v17  ;;  %v526_v15 = vsel %vm524_vm3, 16843009, %v3220_v14 }
  0x22   :  { %v541_v16 = vrot.slane %v526_v15, %v3319_v13 }
  0x24   :  { %2952 = vmatpush3.bf16.msra.mxu0 %v2949_v17  ;;  %v521_v17 = vld [vmem:[%s4332_s0] sm:$0x3]  ;;  %s3223_s0 = smov 32  }
  0x25   :  { %vm523_vm4 = vnez %v521_v17 }
  0xe8   :  { %v2804_v19 = vpop.f32.mrb[0].mxu0 }
  0xe9   :  { %v114_v20 = vpop.f32.mrb[1].mxu0  ;;  %v120_v22 = vadd.f32 %v2804_v19, %v2704_v18  ;;  %v525_v19 = vsel %vm523_vm4, 16843009, %v3220_v14 }
  0xea   :  { %v115_v21 = vadd.f32 %v2704_v18, %v114_v20  ;;  %v3326_v18 = vcombine.high %v541_v16, %v541_v16 }
  0xec   :  { %2809 = vmatprep.mubr.msk.f32.mxu1 %vm4338_vm1, %v115_v21  ;;  %v573_v20 = vshrl.u32 %v3326_v18, 8  ;;  %v564_v21 = vshrl.u32 %v541_v16, 8 }
  0xed   :  { %2810 = vmatmul.mubr.msk.f32.vlgmr.msra.gmra.mrb[0].mxu1 %vm4338_vm1, %v120_v22  ;;  %v3331_v22 = vrot.slane %v525_v19, %v3319_v13 }
  0xef   :  { %v550_v12 = vshrl.u32 %v3331_v22, 24 }
 0x1c0   :  { %v2811_v31 = vpop.f32.mrb[0].mxu1 }
 0x1c1   :  { %v198_v32 = vpop.f32.mrb[1].mxu1  ;;  %v1221_v33 = vmul.f32 %v2811_v31, %v1213_v23  ;;  %v1223_v34 = vmul.f32 %v2811_v31, %v1215_v24  ;;  %v1225_v35 = vmul.f32 %v2811_v31, %v1217_v26  ;;  %v1227_v36 = vmul.f32 %v2811_v31, %v1219_v27 }
 0x1c2   :  { %2828 = vmatprep.mubr.msk.f32.mxu0 %vm4337_vm2, %v198_v32  ;;  %v1220_v37 = vmul.f32 %v1212_v25, %v198_v32  ;;  %v1222_v38 = vmul.f32 %v1214_v28, %v198_v32  ;;  %v1224_v39 = vmul.f32 %v1216_v29, %v198_v32  ;;  %v1226_v40 = vmul.f32 %v1218_v30, %v198_v32 }
 0x1c3   :  { %2829 = vmatmul.mubr.msk.f32.vlgmr.msra.gmra.mrb[2].mxu0 %vm4337_vm2, %v2811_v31  ;;  %v605_v23 = vpack.c.b16 %v573_v20, %v573_v20  ;;  %v546_v24 = vshrl.u32 %v3331_v22, 8  ;;  %v595_v25 = vpack.c.b16 %v541_v16, %v541_v16  ;;  %v597_v26 = vpack.c.b16 %v564_v21, %v564_v21 }
 0x1c4   :  { %v2953_v41 = vpack.c.bf16 %v1221_v33, %v1220_v37  ;;  %v2957_v42 = vpack.c.bf16 %v1223_v34, %v1222_v38  ;;  %v2961_v43 = vpack.c.bf16 %v1225_v35, %v1224_v39  ;;  %v2965_v44 = vpack.c.bf16 %v1227_v36, %v1226_v40 }
 0x1c5   :  { %v606_v27 = vpack.c.b8 %v605_v23, %v605_v23  ;;  %v581_v28 = vpack.c.b16 %v546_v24, %v546_v24  ;;  %v566_v29 = vshrl.u32 %v541_v16, 16  ;;  %v596_v30 = vpack.c.b8 %v595_v25, %v595_v25 }
 0x1c6   :  { %2954 = vmatprep.subr.bf16.mxu1 %v2953_v41  ;;  %v577_v31 = vshrl.u32 %v3326_v18, 24  ;;  %v568_v32 = vshrl.u32 %v541_v16, 24  ;;  %v598_v33 = vpack.c.b8 %v597_v26, %v597_v26  ;;  %v603_v39 = vpack.c.b16 %v3326_v18, %v3326_v18 }
 0x1c7   :  { %2956 = vmatpush3.bf16.msra.mxu1 %v2953_v41  ;;  %vm624_vm5 = vnez %v606_v27  ;;  %v582_v34 = vpack.c.b8 %v581_v28, %v581_v28  ;;  %v599_v35 = vpack.c.b16 %v566_v29, %v566_v29  ;;  %vm619_vm6 = vnez %v596_v30 }
 0x1c8   :  { %2958 = vmatprep.subr.bf16.mxu1 %v2957_v42  ;;  %v609_v37 = vpack.c.b16 %v577_v31, %v577_v31  ;;  %v601_v38 = vpack.c.b16 %v568_v32, %v568_v32  ;;  %vm620_vm7 = vnez %v598_v33  ;;  %v640_v40 = vsel %vm624_vm5, 16843009, %v3220_v14 }
 0x1c9   :  { %v635_v41 = vsel %vm619_vm6, 16843009, %v3220_v14  ;;  %vm612_vm8 = vnez %v582_v34  ;;  %v585_v27 = vpack.c.b16 %v550_v12, %v550_v12 }
 0x1ca   :  { %v602_v45 = vpack.c.b8 %v601_v38, %v601_v38 }
 0x1cb   :  { %2960 = vmatpush3.bf16.msra.mxu1 %v2957_v42  ;;  %v600_v42 = vpack.c.b8 %v599_v35, %v599_v35  ;;  %v3366_v35 = vcombine.high %v3331_v22, %v3331_v22  ;;  %v586_v38 = vpack.c.b8 %v585_v27, %v585_v27 }
 0x1cc   :  { %2962 = vmatprep.subr.bf16.mxu1 %v2961_v43  ;;  %vm622_vm11 = vnez %v602_v45 }
 0x1cd   :  { %vm621_vm9 = vnez %v600_v42  ;;  %vm614_vm5 = vnez %v586_v38 }
 0x1cf   :  { %2964 = vmatpush3.bf16.msra.mxu1 %v2961_v43  ;;  %v636_v43 = vsel %vm620_vm7, 16843009, %v3220_v14 }
 0x1d0   :  { %2966 = vmatprep.subr.bf16.mxu1 %v2965_v44 }
 0x1d3   :  { %2968 = vmatpush3.bf16.msra.mxu1 %v2965_v44  ;;  %v610_v44 = vpack.c.b8 %v609_v37, %v609_v37 }
 0x1d5   :  { %vm626_vm10 = vnez %v610_v44 }
 0x296   :  { %v2830_v49 = vpop.f32.mrb[2].mxu0 }
 0x297   :  { %v288_v50 = vpop.f32.mrb[3].mxu0  ;;  %v404_v51 = vrot.slane %v2830_v49, %v3279_v48  ;;  %v396_v52 = vrot.slane %v2830_v49, %v3276_v47  ;;  %v420_v55 = vrot.slane %v2830_v49, %v3284_v53  ;;  %v412_v56 = vrot.slane %v2830_v49, %v3287_v54 }
 0x298   :  { %v436_v59 = vrot.slane %v2830_v49, %v3292_v57  ;;  %v428_v60 = vrot.slane %v2830_v49, %v3295_v58  ;;  %v444_v62 = vrot.slane %v2830_v49, %v3300_v61  ;;  %v348_v63 = vrot.slane %v288_v50, %v3287_v54 }
 0x299   :  { %407 = vbcast.lane.b32.xlu1 %v404_v51, 260  ;;  %399 = vbcast.lane.b32.xlu0 %v396_v52, 260  ;;  %v356_v0 = vrot.slane %v288_v50, %v3284_v53  ;;  %v332_v1 = vrot.slane %v288_v50, %v3276_v47  ;;  %v372_v2 = vrot.slane %v288_v50, %v3292_v57  ;;  %v656_v51 = vunpack.c.0.s8 %v640_v40 }
 0x29a   :  { %v340_v3 = vrot.slane %v288_v50, %v3279_v48  ;;  %v388_v5 = vrot.slane %v288_v50, %v3309_v4  ;;  %v364_v6 = vrot.slane %v288_v50, %v3295_v58  ;;  %v452_v7 = vrot.slane %v2830_v49, %v3309_v4 }
 0x29b   :  { %v380_v8 = vrot.slane %v288_v50, %v3300_v61  ;;  %v604_v52 = vpack.c.b8 %v603_v39, %v603_v39  ;;  %v587_v39 = vpack.c.b16 %v3366_v35, %v3366_v35 }
 0x29d   :  { %423 = vbcast.lane.b32.xlu1 %v420_v55, 260  ;;  %415 = vbcast.lane.b32.xlu0 %v412_v56, 260  ;;  %v628_v56 = vsel %vm612_vm8, 16843009, %v3220_v14  ;;  %vm623_vm12 = vnez %v604_v52 }
 0x29e   :  { %v639_v10 = vsel %vm623_vm12, 16843009, %v3220_v14 }
 0x29f   :  { %v655_v23 = vunpack.c.0.s8 %v639_v10 }
 0x2a1   :  { %439 = vbcast.lane.b32.xlu1 %v436_v59, 260  ;;  %431 = vbcast.lane.b32.xlu0 %v428_v60, 260  ;;  %v651_v59 = vunpack.c.0.s8 %v635_v41  ;;  %v652_v60 = vunpack.c.0.s8 %v636_v43  ;;  %v683_v37 = vpack.i.b16 %v655_v23, %v655_v23 }
 0x2a5   :  { %447 = vbcast.lane.b32.xlu0 %v444_v62, 260  ;;  %351 = vbcast.lane.b32.xlu1 %v348_v63, 260  ;;  %v548_v63 = vshrl.u32 %v3331_v22, 16 }
 0x2a7   :  { %v583_v11 = vpack.c.b16 %v548_v63, %v548_v63 }
 0x2a9   :  { %359 = vbcast.lane.b32.xlu1 %v356_v0, 260  ;;  %335 = vbcast.lane.b32.xlu0 %v332_v1, 260  ;;  %v685_v0 = vpack.i.b16 %v656_v51, %v656_v51  ;;  %v644_v1 = vunpack.c.0.s8 %v628_v56  ;;  %v584_v26 = vpack.c.b8 %v583_v11, %v583_v11  ;;  %v684_v51 = vpack.i.b8 %v683_v37, %v683_v37 }
 0x2ab   :  { %v686_v15 = vpack.i.b8 %v685_v0, %v685_v0  ;;  %v661_v16 = vpack.i.b16 %v644_v1, %v644_v1  ;;  %vm613_vm3 = vnez %v584_v26  ;;  %v557_v26 = vshrl.u32 %v3366_v35, 16 }
 0x2ac   :  { %v629_v52 = vsel %vm613_vm3, 16843009, %v3220_v14 }
 0x2ad   :  { %375 = vbcast.lane.b32.xlu1 %v372_v2, 260  ;;  %343 = vbcast.lane.b32.xlu0 %v340_v3, 260  ;;  %v637_v2 = vsel %vm621_vm9, 16843009, %v3220_v14  ;;  %vm704_vm14 = vnez %v686_v15  ;;  %v662_v29 = vpack.i.b8 %v661_v16, %v661_v16  ;;  %v645_v1 = vunpack.c.0.s8 %v629_v52 }
 0x2ae   :  { %v653_v17 = vunpack.c.0.s8 %v637_v2  ;;  %v720_v40 = vsel %vm704_vm14, 16843009, %v3220_v14  ;;  %vm703_vm9 = vnez %v684_v51 }
 0x2af   :  { %vm692_vm4 = vnez %v662_v29 }
 0x2b0   :  { %v679_v30 = vpack.i.b16 %v653_v17, %v653_v17  ;;  %v708_v63 = vsel %vm692_vm4, 16843009, %v3220_v14 }
 0x2b1   :  { %391 = vbcast.lane.b32.xlu1 %v388_v5, 260  ;;  %367 = vbcast.lane.b32.xlu0 %v364_v6, 260  ;;  %v675_v5 = vpack.i.b16 %v651_v59, %v651_v59  ;;  %v677_v6 = vpack.i.b16 %v652_v60, %v652_v60  ;;  %v736_v59 = vunpack.c.0.s8 %v720_v40  ;;  %v588_v60 = vpack.c.b8 %v587_v39, %v587_v39 }
 0x2b2   :  { %v680_v41 = vpack.i.b8 %v679_v30, %v679_v30 }
 0x2b3   :  { %v676_v21 = vpack.i.b8 %v675_v5, %v675_v5  ;;  %v678_v25 = vpack.i.b8 %v677_v6, %v677_v6  ;;  %v630_v6 = vsel %vm614_vm5, 16843009, %v3220_v14 }
 0x2b4   :  { %vm701_vm6 = vnez %v680_v41 }
 0x2b5   :  { %455 = vbcast.lane.b32.xlu1 %v452_v7, 260  ;;  %383 = vbcast.lane.b32.xlu0 %v380_v8, 260  ;;  %v642_v7 = vsel %vm626_vm10, 16843009, %v3220_v14  ;;  %v638_v8 = vsel %vm622_vm11, 16843009, %v3220_v14  ;;  %vm699_vm15 = vnez %v676_v21  ;;  %vm700_vm0 = vnez %v678_v25 }
 0x2b6   :  { %v658_v19 = vunpack.c.0.s8 %v642_v7  ;;  %v654_v20 = vunpack.c.0.s8 %v638_v8  ;;  %vm3381_vm10 = vcmp.ne.s32.totalorder %v736_v59, 0  ;;  %v724_v8 = vunpack.c.0.s8 %v708_v63 }
 0x2b7   :  { %vm615_vm11 = vnez %v588_v60  ;;  %v717_v12 = vsel %vm701_vm6, 16843009, %v3220_v14  ;;  %v646_v21 = vunpack.c.0.s8 %v630_v6  ;;  %v768_v27 = vsel %vm3381_vm10, 1, %v3220_v14 }
 0x2b8   :  { %v689_v32 = vpack.i.b16 %v658_v19, %v658_v19  ;;  %v681_v33 = vpack.i.b16 %v654_v20, %v654_v20  ;;  %v719_v19 = vsel %vm703_vm9, 16843009, %v3220_v14  ;;  %v663_v20 = vpack.i.b16 %v645_v1, %v645_v1 }
 0x2b9   :  { %v631_v25 = vsel %vm615_vm11, 16843009, %v3220_v14  ;;  %v733_v30 = vunpack.c.0.s8 %v717_v12  ;;  %v735_v37 = vunpack.c.0.s8 %v719_v19  ;;  %v665_v40 = vpack.i.b16 %v646_v21, %v646_v21 }
 0x2ba   :  { %v690_v42 = vpack.i.b8 %v689_v32, %v689_v32  ;;  %v682_v43 = vpack.i.b8 %v681_v33, %v681_v33  ;;  %v664_v39 = vpack.i.b8 %v663_v20, %v663_v20  ;;  %v647_v41 = vunpack.c.0.s8 %v631_v25 }
 0x2bb   :  { %v826_v52 = vrot.slane %v768_v27, %v3276_v47  ;;  %vm3430_vm6 = vcmp.ne.s32.totalorder %v735_v37, 0  ;;  %vm867_vm10 = vcmask 125952  }
 0x2bc   :  { %vm706_vm7 = vnez %v690_v42  ;;  %vm702_vm8 = vnez %v682_v43  ;;  %v559_v42 = vshrl.u32 %v3366_v35, 24  ;;  %v667_v1 = vpack.i.b16 %v647_v41, %v647_v41 }
 0x2bd   :  { %v722_v15 = vsel %vm706_vm7, 16843009, %v3220_v14  ;;  %v718_v16 = vsel %vm702_vm8, 16843009, %v3220_v14  ;;  %vm3434_vm7 = vnez %v664_v39  ;;  %vm3446_vm8 = vcmp.eq.s32.totalorder %v826_v52, 1 }
 0x2be   :  { %v738_v33 = vunpack.c.0.s8 %v722_v15  ;;  %v3456_v21 = vsel %vm3430_vm6, 1, %v3220_v14  ;;  %v575_v39 = vshrl.u32 %v3326_v18, 16 }
 0x2c0   :  { %vm754_vm4 = vcmp.ne.s32.totalorder %v738_v33, 0 }
 0x2c1   :  { %v770_v15 = vsel %vm754_vm4, 1, %v3220_v14 }
 0x2c2   :  { %v834_v33 = vrot.slane %v770_v15, %v3276_v47 }
 0x2d3   :  { %297 = vxpose.xlu0.b32.start [1/2] (short) (narrow) %v288_v50, 8 }
 0x2d7   :  { %298 = vxpose.xlu0.b32.end [2/2] (short) (narrow) %v2830_v49, 8  ;;  %v579_v49 = vpack.c.b16 %v3331_v22, %v3331_v22  ;;  %v715_v22 = vsel %vm699_vm15, 16843009, %v3220_v14  ;;  %vm3406_vm15 = vcmp.ne.s32.totalorder %v724_v8, 0 }
 0x2d8   :  { %v731_v2 = vunpack.c.0.s8 %v715_v22  ;;  %v756_v59 = vsel %vm3406_vm15, 1, %v3220_v14 }
 0x2d9   :  { %v580_v62 = vpack.c.b8 %v579_v49, %v579_v49  ;;  %v716_v49 = vsel %vm700_vm0, 16843009, %v3220_v14  ;;  %vm749_vm0 = vcmp.ne.s32.totalorder %v733_v30, 0 }
 0x2da   :  { %v732_v5 = vunpack.c.0.s8 %v716_v49  ;;  %v591_v49 = vpack.c.b16 %v557_v26, %v557_v26  ;;  %v765_v12 = vsel %vm749_vm0, 1, %v3220_v14  ;;  %v668_v26 = vpack.i.b8 %v667_v1, %v667_v1 }
 0x2db   :  { %vm611_vm13 = vnez %v580_v62  ;;  %v555_v62 = vshrl.u32 %v3366_v35, 8 }
 0x2dc   :  { %v627_v24 = vsel %vm611_vm13, 16843009, %v3220_v14  ;;  %vm3393_vm13 = vcmp.ne.s32.totalorder %v731_v2, 0  ;;  %vm3397_vm14 = vcmp.ne.s32.totalorder %v732_v5, 0  ;;  %v593_v2 = vpack.c.b16 %v559_v42, %v559_v42 }
 0x2dd   :  { %v643_v34 = vunpack.c.0.s8 %v627_v24  ;;  %v589_v10 = vpack.c.b16 %v555_v62, %v555_v62  ;;  %v764_v22 = vsel %vm3397_vm14, 1, %v3220_v14  ;;  %v592_v7 = vpack.c.b8 %v591_v49, %v591_v49 }
 0x2de   :  { %v810_v8 = vrot.slane %v764_v22, %v3276_v47  ;;  %v709_v24 = vsel %vm3434_vm7, 16843009, %v3220_v14  ;;  %v594_v29 = vpack.c.b8 %v593_v2, %v593_v2  ;;  %vm3495_vm0 = vnez %v668_v26 }
 0x2df   :  { %v659_v44 = vpack.i.b16 %v643_v34, %v643_v34  ;;  %v590_v32 = vpack.c.b8 %v589_v10, %v589_v10  ;;  %v734_v34 = vunpack.c.0.s8 %v718_v16  ;;  %v778_v10 = vrot.slane %v756_v59, %v3276_v47 }
 0x2e0   :  { %vm3473_vm14 = vcmp.eq.s32.totalorder %v810_v8, 1  ;;  %v725_v42 = vunpack.c.0.s8 %v709_v24 }
 0x2e1   :  { %v660_v0 = vpack.i.b8 %v659_v44, %v659_v44  ;;  %v763_v44 = vsel %vm3393_vm13, 1, %v3220_v14  ;;  %vm616_vm3 = vnez %v590_v32  ;;  %vm3426_vm5 = vcmp.ne.s32.totalorder %v734_v34, 0 }
 0x2e2   :  { %v806_v5 = vrot.slane %v763_v44, %v3276_v47  ;;  %v632_v6 = vsel %vm616_vm3, 16843009, %v3220_v14  ;;  %v766_v20 = vsel %vm3426_vm5, 1, %v3220_v14  ;;  %v814_v32 = vrot.slane %v765_v12, %v3276_v47 }
 0x2e3   :  { %vm691_vm12 = vnez %v660_v0  ;;  %v666_v0 = vpack.i.b8 %v665_v40, %v665_v40  ;;  %v648_v27 = vunpack.c.0.s8 %v632_v6  ;;  %vm617_vm13 = vnez %v592_v7 }
 0x2e4   :  { %v707_v38 = vsel %vm691_vm12, 16843009, %v3220_v14  ;;  %vm3467_vm12 = vcmp.eq.s32.totalorder %v806_v5, 1  ;;  %vm3477_vm15 = vcmp.eq.s32.totalorder %v778_v10, 1  ;;  %v822_v40 = vrot.slane %v3456_v21, %v3276_v47 }
 0x2e5   :  { %v723_v62 = vunpack.c.0.s8 %v707_v38  ;;  %vm694_vm11 = vnez %v666_v0  ;;  %v818_v38 = vrot.slane %v766_v20, %v3276_v47  ;;  %v3499_v52 = vpack.i.b16 %v648_v27, %v648_v27 }
 0x2e6   :  { %v3491_v44 = vsel %vm694_vm11, 16843009, %v3220_v14  ;;  %v633_v18 = vsel %vm617_vm13, 16843009, %v3220_v14  ;;  %vm3502_vm3 = vnez %v594_v29  ;;  %vm3514_vm4 = vcmp.eq.s32.totalorder %v814_v32, 1 }
 0x2e7   :  { %vm3458_vm9 = vcmp.ne.s32.totalorder %v723_v62, 0  ;;  %vm3518_vm5 = vcmp.eq.s32.totalorder %v834_v33, 1  ;;  %vm3531_vm1 = vcmp.eq.s32.totalorder %v818_v38, 1  ;;  %v670_v29 = vpack.i.b8 %v3499_v52, %v3499_v52 }
 0x2e8   :  { %v3488_v41 = vsel %vm3458_vm9, 1, %v3220_v14  ;;  %vm3527_vm9 = vcmp.ne.s32.totalorder %v725_v42, 0  ;;  %v649_v33 = vunpack.c.0.s8 %v633_v18  ;;  %v634_v34 = vsel %vm3502_vm3, 16843009, %v3220_v14 }
 0x2e9   :  { %v711_v18 = vsel %vm3495_vm0, 16843009, %v3220_v14  ;;  %v757_v1 = vsel %vm3527_vm9, 1, %v3220_v14 }
 0x2ea   :  { %v671_v49 = vpack.i.b16 %v649_v33, %v649_v33 }
 0x2ec   :  { %v672_v7 = vpack.i.b8 %v671_v49, %v671_v49 }
 0x30b   :  { %v3335_v36 = vpop.permute.xlu0 %399  ;;  %v3344_v50 = vpop.permute.xlu1 %407 }
 0x30f   :  { %v3346_v55 = vpop.permute.xlu0 %415  ;;  %v3351_v3 = vpop.permute.xlu1 %423 }
 0x313   :  { %v3355_v9 = vpop.permute.xlu0 %431  ;;  %v3360_v28 = vpop.permute.xlu1 %439 }
 0x317   :  { %v3362_v31 = vpop.permute.xlu0 %447  ;;  %v3371_v45 = vpop.permute.xlu1 %351 }
 0x31b   :  { %v3376_v56 = vpop.permute.xlu0 %335  ;;  %v3385_v11 = vpop.permute.xlu1 %359 }
 0x31f   :  { %v3390_v17 = vpop.permute.xlu0 %343  ;;  %v3412_v43 = vpop.permute.xlu1 %375 }
 0x323   :  { %v3420_v51 = vpop.permute.xlu0 %367  ;;  %v3444_v16 = vpop.permute.xlu1 %391 }
 0x327   :  { %v3465_v25 = vpop.permute.xlu0 %383  ;;  %v456_v35 = vpop.permute.xlu1 %455 }
 0x353   :  { %v3493_v22 = vpop.trf.xlu0 }
 0x354   :  { %v470_v60 = vadd.f32 %v3360_v28, %v3493_v22  ;;  %v465_v62 = vadd.f32 %v3335_v36, %v3493_v22  ;;  %v466_v63 = vadd.f32 %v3344_v50, %v3493_v22  ;;  %v458_v0 = vadd.f32 %v3390_v17, %v3493_v22 }
 0x355   :  { %v467_v28 = vadd.f32 %v3346_v55, %v3493_v22  ;;  %v472_v5 = vadd.f32 %v456_v35, %v3493_v22  ;;  %v468_v36 = vadd.f32 %v3351_v3, %v3493_v22  ;;  %v607_v50 = vpack.c.b16 %v575_v39, %v575_v39 }
 0x356   :  { %vm486_vm6 = vcmp.ge.f32.partialorder %v470_v60, 0.0  ;;  %v502_v6 = vmul.f32 0.2, %v470_v60  ;;  %vm481_vm7 = vcmp.ge.f32.partialorder %v465_v62, 0.0  ;;  %v497_v17 = vmul.f32 0.2, %v465_v62 }
 0x357   :  { %vm482_vm11 = vcmp.ge.f32.partialorder %v466_v63, 0.0  ;;  %v498_v8 = vmul.f32 0.2, %v466_v63  ;;  %vm474_vm13 = vcmp.ge.f32.partialorder %v458_v0, 0.0  ;;  %v490_v10 = vmul.f32 0.2, %v458_v0 }
 0x358   :  { %v518_v12 = vsel %vm486_vm6, %v470_v60, %v502_v6  ;;  %v513_v55 = vsel %vm481_vm7, %v465_v62, %v497_v17  ;;  %vm483_vm2 = vcmp.ge.f32.partialorder %v467_v28, 0.0  ;;  %v499_v15 = vmul.f32 0.2, %v467_v28 }
 0x359   :  { %v3537_v3 = vsel %vm3446_vm8, %v518_v12, -1e+30  ;;  %v3541_v21 = vsel %vm3467_vm12, %v513_v55, -1e+30  ;;  %v514_v23 = vsel %vm482_vm11, %v466_v63, %v498_v8  ;;  %v506_v24 = vsel %vm474_vm13, %v458_v0, %v490_v10 }
 0x35a   :  { %v907_v26 = vsel %vm867_vm10, %v3537_v3, -inf  ;;  %v892_v27 = vsel %vm867_vm10, %v3541_v21, -inf  ;;  %v608_v32 = vpack.c.b8 %v607_v50, %v607_v50  ;;  %v3551_v19 = vsel %vm3473_vm14, %v514_v23, -1e+30 }
 0x35b   :  { %908 = vmax.xlane.f32.xlu0 %v907_v26  ;;  %893 = vmax.xlane.f32.xlu1 %v892_v27  ;;  %v3555_v30 = vsel %vm3477_vm15, %v506_v24, -1e+30  ;;  %vm488_vm8 = vcmp.ge.f32.partialorder %v472_v5, 0.0  ;;  %v515_v38 = vsel %vm483_vm2, %v467_v28, %v499_v15  ;;  %v504_v39 = vmul.f32 0.2, %v472_v5 }
 0x35c   :  { %v469_v42 = vadd.f32 %v3355_v9, %v3493_v22  ;;  %vm3560_vm12 = vcmp.eq.s32.totalorder %v822_v40, 1  ;;  %vm484_vm14 = vcmp.ge.f32.partialorder %v468_v36, 0.0  ;;  %v500_v37 = vmul.f32 0.2, %v468_v36 }
 0x35d   :  { %v726_v35 = vunpack.c.0.s8 %v3491_v44  ;;  %v895_v60 = vsel %vm867_vm10, %v3551_v19, -inf  ;;  %v871_v9 = vsel %vm867_vm10, %v3555_v30, -inf  ;;  %v520_v40 = vsel %vm488_vm8, %v472_v5, %v504_v39 }
 0x35e   :  { %vm625_vm2 = vnez %v608_v32  ;;  %v3577_v59 = vsel %vm3514_vm4, %v515_v38, -1e+30  ;;  %v3581_v44 = vsel %vm3518_vm5, %v520_v40, -1e+30  ;;  %v650_v62 = vunpack.c.0.s8 %v634_v34 }
 0x35f   :  { %896 = vmax.xlane.f32.xlu1 %v895_v60  ;;  %872 = vmax.xlane.f32.xlu0 %v871_v9  ;;  %v516_v63 = vsel %vm484_vm14, %v468_v36, %v500_v37  ;;  %v501_v0 = vmul.f32 0.2, %v469_v42  ;;  %v457_v28 = vadd.f32 %v3376_v56, %v3493_v22  ;;  %vm696_vm15 = vnez %v670_v29 }
 0x360   :  { %vm485_vm0 = vcmp.ge.f32.partialorder %v469_v42, 0.0  ;;  %v774_v5 = vrot.slane %v3488_v41, %v3276_v47  ;;  %v641_v2 = vsel %vm625_vm2, 16843009, %v3220_v14  ;;  %v898_v50 = vsel %vm867_vm10, %v3577_v59, -inf }
 0x361   :  { %v913_v36 = vsel %vm867_vm10, %v3581_v44, -inf  ;;  %vm3595_vm3 = vcmp.ne.s32.totalorder %v726_v35, 0  ;;  %v727_v56 = vunpack.c.0.s8 %v711_v18  ;;  %v3601_v41 = vsel %vm3531_vm1, %v516_v63, -1e+30 }
 0x362   :  { %v712_v17 = vsel %vm696_vm15, 16843009, %v3220_v14  ;;  %v673_v8 = vpack.i.b16 %v650_v62, %v650_v62  ;;  %v517_v10 = vsel %vm485_vm0, %v469_v42, %v501_v0  ;;  %v489_v12 = vmul.f32 0.2, %v457_v28 }
 0x363   :  { %899 = vmax.xlane.f32.xlu1 %v898_v50  ;;  %914 = vmax.xlane.f32.xlu0 %v913_v36  ;;  %v459_v55 = vadd.f32 %v3371_v45, %v3493_v22  ;;  %v657_v15 = vunpack.c.0.s8 %v641_v2  ;;  %vm473_vm4 = vcmp.ge.f32.partialorder %v457_v28, 0.0  ;;  %vm3606_vm5 = vcmp.eq.s32.totalorder %v774_v5, 1 }
 0x364   :  { %v901_v20 = vsel %vm867_vm10, %v3601_v41, -inf  ;;  %v782_v24 = vrot.slane %v757_v1, %v3276_v47  ;;  %v758_v26 = vsel %vm3595_vm3, 1, %v3220_v14  ;;  %vm3616_vm1 = vcmp.ne.s32.totalorder %v727_v56, 0 }
 0x365   :  { %v3622_v45 = vsel %vm3560_vm12, %v517_v10, -1e+30  ;;  %v728_v29 = vunpack.c.0.s8 %v712_v17  ;;  %vm697_vm6 = vnez %v672_v7  ;;  %v674_v32 = vpack.i.b8 %v673_v8, %v673_v8 }
 0x366   :  { %v505_v33 = vsel %vm473_vm4, %v457_v28, %v489_v12  ;;  %v491_v38 = vmul.f32 0.2, %v459_v55  ;;  %v460_v39 = vadd.f32 %v3385_v11, %v3493_v22  ;;  %v687_v42 = vpack.i.b16 %v657_v15, %v657_v15 }
 0x367   :  { %902 = vmax.xlane.f32.xlu1 %v901_v20  ;;  %vm475_vm7 = vcmp.ge.f32.partialorder %v459_v55, 0.0  ;;  %v904_v34 = vsel %vm867_vm10, %v3622_v45, -inf  ;;  %vm3628_vm9 = vcmp.eq.s32.totalorder %v782_v24, 1  ;;  %v786_v52 = vrot.slane %v758_v26, %v3276_v47 }
 0x368   :  { %v713_v35 = vsel %vm697_vm6, 16843009, %v3220_v14  ;;  %v3636_v18 = vsel %vm3606_vm5, %v505_v33, -1e+30  ;;  %v759_v11 = vsel %vm3616_vm1, 1, %v3220_v14  ;;  %vm744_vm11 = vcmp.ne.s32.totalorder %v728_v29, 0 }
 0x369   :  { %vm698_vm13 = vnez %v674_v32  ;;  %v507_v60 = vsel %vm475_vm7, %v459_v55, %v491_v38  ;;  %v492_v9 = vmul.f32 0.2, %v460_v39  ;;  %v461_v40 = vadd.f32 %v3420_v51, %v3493_v22 }
 0x36a   :  { %v688_v49 = vpack.i.b8 %v687_v42, %v687_v42  ;;  %vm476_vm8 = vcmp.ge.f32.partialorder %v460_v39, 0.0  ;;  %v729_v62 = vunpack.c.0.s8 %v713_v35  ;;  %v868_v63 = vsel %vm867_vm10, %v3636_v18, -inf }
 0x36b   :  { %905 = vmax.xlane.f32.xlu1 %v904_v34  ;;  %vm838_vm12 = vcmp.eq.s32.totalorder %v786_v52, 1  ;;  %v3647_v0 = vsel %vm3628_vm9, %v507_v60, -1e+30  ;;  %v790_v28 = vrot.slane %v759_v11, %v3276_v47  ;;  %v760_v5 = vsel %vm744_vm11, 1, %v3220_v14 }
 0x36c   :  { %v714_v1 = vsel %vm698_vm13, 16843009, %v3220_v14  ;;  %v508_v2 = vsel %vm476_vm8, %v460_v39, %v492_v9  ;;  %v493_v51 = vmul.f32 0.2, %v461_v40  ;;  %v462_v50 = vadd.f32 %v3412_v43, %v3493_v22 }
 0x36d   :  { %vm705_vm14 = vnez %v688_v49  ;;  %vm477_vm2 = vcmp.ge.f32.partialorder %v461_v40, 0.0  ;;  %vm745_vm15 = vcmp.ne.s32.totalorder %v729_v62, 0  ;;  %v874_v36 = vsel %vm867_vm10, %v3647_v0, -inf }
 0x36e   :  { %v730_v6 = vunpack.c.0.s8 %v714_v1  ;;  %v3656_v56 = vsel %vm838_vm12, %v508_v2, -1e+30  ;;  %vm839_vm0 = vcmp.eq.s32.totalorder %v790_v28, 1  ;;  %v794_v17 = vrot.slane %v760_v5, %v3276_v47 }
 0x36f   :  { %869 = vmax.xlane.f32.xlu1 %v868_v63  ;;  %v721_v7 = vsel %vm705_vm14, 16843009, %v3220_v14  ;;  %v509_v8 = vsel %vm477_vm2, %v461_v40, %v493_v51  ;;  %v494_v10 = vmul.f32 0.2, %v462_v50  ;;  %v463_v43 = vadd.f32 %v3465_v25, %v3493_v22 }
 0x370   :  { %v761_v12 = vsel %vm745_vm15, 1, %v3220_v14  ;;  %vm478_vm3 = vcmp.ge.f32.partialorder %v462_v50, 0.0  ;;  %v877_v55 = vsel %vm867_vm10, %v3656_v56, -inf  ;;  %vm746_vm4 = vcmp.ne.s32.totalorder %v730_v6, 0 }
 0x371   :  { %v737_v15 = vunpack.c.0.s8 %v721_v7  ;;  %v3665_v23 = vsel %vm839_vm0, %v509_v8, -1e+30  ;;  %v798_v20 = vrot.slane %v761_v12, %v3276_v47  ;;  %v510_v24 = vsel %vm478_vm3, %v462_v50, %v494_v10 }
 0x372   :  { %vm840_vm5 = vcmp.eq.s32.totalorder %v794_v17, 1  ;;  %v495_v26 = vmul.f32 0.2, %v463_v43  ;;  %v464_v27 = vadd.f32 %v3444_v16, %v3493_v22  ;;  %vm479_vm1 = vcmp.ge.f32.partialorder %v463_v43, 0.0 }
 0x373   :  { %875 = vmax.xlane.f32.xlu1 %v874_v36  ;;  %v762_v25 = vsel %vm746_vm4, 1, %v3220_v14  ;;  %v880_v29 = vsel %vm867_vm10, %v3665_v23, -inf  ;;  %vm753_vm6 = vcmp.ne.s32.totalorder %v737_v15, 0  ;;  %v3673_v32 = vsel %vm840_vm5, %v510_v24, -1e+30 }
 0x374   :  { %vm841_vm7 = vcmp.eq.s32.totalorder %v798_v20, 1  ;;  %v511_v33 = vsel %vm479_vm1, %v463_v43, %v495_v26  ;;  %v496_v38 = vmul.f32 0.2, %v464_v27  ;;  %v802_v39 = vrot.slane %v762_v25, %v3276_v47 }
 0x375   :  { %v471_v42 = vadd.f32 %v3362_v31, %v3493_v22  ;;  %vm480_vm9 = vcmp.ge.f32.partialorder %v464_v27, 0.0  ;;  %v769_v16 = vsel %vm753_vm6, 1, %v3220_v14  ;;  %v883_v34 = vsel %vm867_vm10, %v3673_v32, -inf }
 0x376   :  { %v3681_v37 = vsel %vm841_vm7, %v511_v33, -1e+30  ;;  %v512_v52 = vsel %vm480_vm9, %v464_v27, %v496_v38  ;;  %vm842_vm11 = vcmp.eq.s32.totalorder %v802_v39, 1  ;;  %v830_v11 = vrot.slane %v769_v16, %v3276_v47 }
 0x377   :  { %878 = vmax.xlane.f32.xlu1 %v877_v55  ;;  %v503_v35 = vmul.f32 0.2, %v471_v42  ;;  %vm487_vm13 = vcmp.ge.f32.partialorder %v471_v42, 0.0  ;;  %v886_v60 = vsel %vm867_vm10, %v3681_v37, -inf  ;;  %v3686_v31 = vsel %vm842_vm11, %v512_v52, -1e+30 }
 0x378   :  { %vm849_vm8 = vcmp.eq.s32.totalorder %v830_v11, 1  ;;  %v889_v9 = vsel %vm867_vm10, %v3686_v31, -inf  ;;  %vm4339_vm12 = vcmask 392192   ;;  %vm4387_vm14 = vcmask 130048  }
 0x379   :  { %v519_v22 = vsel %vm487_vm13, %v471_v42, %v503_v35  ;;  %vm4340_vm2 = vcmask 261120   ;;  %vm4388_vm15 = vmmov %vm4387_vm14  ;;  %vm4389_vm0 = vcmask 523264  }
 0x37a   :  { %v3690_v40 = vsel %vm849_vm8, %v519_v22, -1e+30  ;;  %vm4390_vm3 = vmmov %vm4389_vm0 }
 0x37b   :  { %881 = vmax.xlane.f32.xlu1 %v880_v29  ;;  %v910_v49 = vsel %vm867_vm10, %v3690_v40, -inf  ;;  %vm4391_vm4 = vmmov %vm4389_vm0 }
 0x37c   :  { %vm4392_vm5 = vmmov %vm4389_vm0 }
 0x37d   :  { %vm4393_vm1 = vmmov %vm4389_vm0 }
 0x37e   :  { %vm4394_vm6 = vmmov %vm4389_vm0 }
 0x37f   :  { %884 = vmax.xlane.f32.xlu1 %v883_v34 }
 0x383   :  { %887 = vmax.xlane.f32.xlu1 %v886_v60 }
 0x387   :  { %890 = vmax.xlane.f32.xlu1 %v889_v9 }
 0x38b   :  { %911 = vmax.xlane.f32.xlu1 %v910_v49 }
 0x3e8   :  { %v894_v62 = vpop.xlane.xlu1 %893  ;;  %v909_v2 = vpop.xlane.xlu0 %908 }
 0x3e9   :  { %v924_v63 = vsub.f32 %v3541_v21, %v894_v62  ;;  %v929_v6 = vsub.f32 %v3537_v3, %v909_v2 }
 0x3eb   :  { %v948_v28 = vmul.f32 1.442695, %v924_v63  ;;  %v958_v21 = vmul.f32 1.442695, %v929_v6 }
 0x3ec   :  { %v897_v5 = vpop.xlane.xlu1 %896  ;;  %v873_v7 = vpop.xlane.xlu0 %872 }
 0x3ed   :  { %v925_v1 = vsub.f32 %v3551_v19, %v897_v5  ;;  %3048 = vpow2.f32 %v948_v28  ;;  %v917_v43 = vsub.f32 %v3555_v30, %v873_v7 }
 0x3ef   :  { %v950_v51 = vmul.f32 1.442695, %v925_v1  ;;  %v934_v20 = vmul.f32 1.442695, %v917_v43 }
 0x3f0   :  { %v900_v50 = vpop.xlane.xlu1 %899  ;;  %v915_v2 = vpop.xlane.xlu0 %914 }
 0x3f1   :  { %3050 = vpow2.f32 %v950_v51  ;;  %v926_v36 = vsub.f32 %v3577_v59, %v900_v50 }
 0x3f3   :  { %v952_v17 = vmul.f32 1.442695, %v926_v36 }
 0x3f4   :  { %v903_v8 = vpop.xlane.xlu1 %902 }
 0x3f5   :  { %3052 = vpow2.f32 %v952_v17  ;;  %v927_v10 = vsub.f32 %v3601_v41, %v903_v8  ;;  %v931_v17 = vsub.f32 %v3581_v44, %v915_v2 }
 0x3f7   :  { %v954_v12 = vmul.f32 1.442695, %v927_v10  ;;  %v3700_v19 = vpop.eup %3048  ;;  %v962_v43 = vmul.f32 1.442695, %v931_v17 }
 0x3f8   :  { %v906_v55 = vpop.xlane.xlu1 %905  ;;  %v988_v59 = vsel %vm867_vm10, %v3700_v19, 0.0 }
 0x3f9   :  { %3054 = vpow2.f32 %v954_v12  ;;  %v928_v15 = vsub.f32 %v3622_v45, %v906_v55  ;;  %989 = vadd.xlane.f32.xlu1 %v988_v59 }
 0x3fa   :  { %3056 = vpow2.f32 %v958_v21 }
 0x3fb   :  { %v3705_v3 = vpop.eup %3050  ;;  %v956_v24 = vmul.f32 1.442695, %v928_v15 }
 0x3fc   :  { %v870_v41 = vpop.xlane.xlu1 %869  ;;  %v991_v30 = vsel %vm867_vm10, %v3705_v3, 0.0 }
 0x3fd   :  { %3058 = vpow2.f32 %v956_v24  ;;  %v916_v26 = vsub.f32 %v3636_v18, %v870_v41  ;;  %992 = vadd.xlane.f32.xlu0 %v991_v30 }
 0x3fe   :  { %3060 = vpow2.f32 %v934_v20 }
 0x3ff   :  { %v3710_v27 = vpop.eup %3052  ;;  %v932_v45 = vmul.f32 1.442695, %v916_v26 }
 0x400   :  { %v876_v25 = vpop.xlane.xlu1 %875  ;;  %v994_v29 = vsel %vm867_vm10, %v3710_v27, 0.0 }
 0x401   :  { %3062 = vpow2.f32 %v932_v45  ;;  %v918_v33 = vsub.f32 %v3647_v0, %v876_v25  ;;  %995 = vadd.xlane.f32.xlu1 %v994_v29 }
 0x403   :  { %v3715_v38 = vpop.eup %3054  ;;  %v936_v39 = vmul.f32 1.442695, %v918_v33 }
 0x404   :  { %v879_v42 = vpop.xlane.xlu1 %878  ;;  %v997_v18 = vsel %vm867_vm10, %v3715_v38, 0.0  ;;  %v3719_v16 = vpop.eup %3056 }
 0x405   :  { %3064 = vpow2.f32 %v936_v39  ;;  %v919_v34 = vsub.f32 %v3656_v56, %v879_v42  ;;  %998 = vadd.xlane.f32.xlu0 %v997_v18  ;;  %v1003_v0 = vsel %vm867_vm10, %v3719_v16, 0.0 }
 0x407   :  { %v3722_v52 = vpop.eup %3058  ;;  %v938_v35 = vmul.f32 1.442695, %v919_v34 }
 0x408   :  { %v882_v11 = vpop.xlane.xlu1 %881  ;;  %v1000_v60 = vsel %vm867_vm10, %v3722_v52, 0.0  ;;  %v3728_v22 = vpop.eup %3060 }
 0x409   :  { %3066 = vpow2.f32 %v938_v35  ;;  %v920_v9 = vsub.f32 %v3665_v23, %v882_v11  ;;  %1004 = vadd.xlane.f32.xlu0 %v1003_v0  ;;  %1001 = vadd.xlane.f32.xlu1 %v1000_v60  ;;  %v967_v63 = vsel %vm867_vm10, %v3728_v22, 0.0 }
 0x40b   :  { %v3731_v49 = vpop.eup %3062  ;;  %v940_v56 = vmul.f32 1.442695, %v920_v9 }
 0x40c   :  { %v885_v62 = vpop.xlane.xlu1 %884  ;;  %v964_v28 = vsel %vm867_vm10, %v3731_v49, 0.0 }
 0x40d   :  { %3068 = vpow2.f32 %v940_v56  ;;  %v921_v5 = vsub.f32 %v3673_v32, %v885_v62  ;;  %968 = vadd.xlane.f32.xlu0 %v967_v63  ;;  %965 = vadd.xlane.f32.xlu1 %v964_v28 }
 0x40f   :  { %v3738_v1 = vpop.eup %3064  ;;  %v942_v23 = vmul.f32 1.442695, %v921_v5 }
 0x410   :  { %v888_v51 = vpop.xlane.xlu1 %887  ;;  %v970_v50 = vsel %vm867_vm10, %v3738_v1, 0.0 }
 0x411   :  { %3070 = vpow2.f32 %v942_v23  ;;  %v922_v36 = vsub.f32 %v3681_v37, %v888_v51  ;;  %971 = vadd.xlane.f32.xlu1 %v970_v50  ;;  %v3221_v51 = vmov 1983009808  }
 0x412   :  { %v1046_v50 = vunpack.c.l.s4 %v3221_v51 }
 0x413   :  { %v3743_v6 = vpop.eup %3066  ;;  %v944_v7 = vmul.f32 1.442695, %v922_v36 }
 0x414   :  { %v891_v32 = vpop.xlane.xlu1 %890  ;;  %v973_v8 = vsel %vm867_vm10, %v3743_v6, 0.0 }
 0x415   :  { %3072 = vpow2.f32 %v944_v7  ;;  %v923_v10 = vsub.f32 %v3686_v31, %v891_v32  ;;  %974 = vadd.xlane.f32.xlu0 %v973_v8 }
 0x417   :  { %v3749_v21 = vpop.eup %3068  ;;  %v946_v12 = vmul.f32 1.442695, %v923_v10 }
 0x418   :  { %v912_v55 = vpop.xlane.xlu1 %911  ;;  %v976_v37 = vsel %vm867_vm10, %v3749_v21, 0.0 }
 0x419   :  { %3074 = vpow2.f32 %v946_v12  ;;  %v930_v44 = vsub.f32 %v3690_v40, %v912_v55  ;;  %977 = vadd.xlane.f32.xlu1 %v976_v37  ;;  %v1047_v12 = vunpack.c.0.s8 %v1046_v50 }
 0x41a   :  { %3076 = vpow2.f32 %v962_v43 }
 0x41b   :  { %v3754_v15 = vpop.eup %3070  ;;  %v960_v59 = vmul.f32 1.442695, %v930_v44 }
 0x41c   :  { %v979_v31 = vsel %vm867_vm10, %v3754_v15, 0.0 }
 0x41d   :  { %3078 = vpow2.f32 %v960_v59  ;;  %980 = vadd.xlane.f32.xlu0 %v979_v31 }
 0x41f   :  { %v3073_v20 = vpop.eup %3072 }
 0x420   :  { %v982_v24 = vsel %vm867_vm10, %v3073_v20, 0.0 }
 0x421   :  { %983 = vadd.xlane.f32.xlu1 %v982_v24 }
 0x423   :  { %v3759_v41 = vpop.eup %3074 }
 0x424   :  { %v985_v30 = vsel %vm867_vm10, %v3759_v41, 0.0  ;;  %v3763_v40 = vpop.eup %3076 }
 0x425   :  { %986 = vadd.xlane.f32.xlu0 %v985_v30  ;;  %v1009_v45 = vsel %vm867_vm10, %v3763_v40, 0.0 }
 0x427   :  { %v3765_v26 = vpop.eup %3078 }
 0x428   :  { %v1006_v25 = vsel %vm867_vm10, %v3765_v26, 0.0 }
 0x429   :  { %1010 = vadd.xlane.f32.xlu0 %v1009_v45  ;;  %1007 = vadd.xlane.f32.xlu1 %v1006_v25  ;;  %v3222_v25 = vmov 1934713408  }
 0x486   :  { %v990_v29 = vpop.xlane.xlu1 %989 }
 0x48a   :  { %v993_v33 = vpop.xlane.xlu0 %992 }
 0x48b   :  { %3080 = vrcp.f32 %v993_v33 }
 0x48e   :  { %v996_v39 = vpop.xlane.xlu1 %995 }
 0x48f   :  { %3082 = vrcp.f32 %v996_v39  ;;  %v3778_v39 = vsub.s32 %v1047_v12, %v3273_v46 }
 0x492   :  { %v999_v42 = vpop.xlane.xlu0 %998 }
 0x495   :  { %v3081_v63 = vpop.eup %3080 }
 0x496   :  { %v1002_v18 = vpop.xlane.xlu1 %1001  ;;  %v1005_v34 = vpop.xlane.xlu0 %1004  ;;  %v1037_v33 = vmul.f32 %v3081_v63, %v3705_v3 }
 0x499   :  { %v3083_v28 = vpop.eup %3082 }
 0x49a   :  { %v966_v35 = vpop.xlane.xlu1 %965  ;;  %v969_v11 = vpop.xlane.xlu0 %968 }
 0x49e   :  { %v972_v0 = vpop.xlane.xlu1 %971 }
 0x4a2   :  { %v975_v60 = vpop.xlane.xlu0 %974 }
 0x4a3   :  { %3084 = vrcp.f32 %v975_v60 }
 0x4a4   :  { %3086 = vrcp.f32 %v969_v11 }
 0x4a5   :  { %3088 = vrcp.f32 %v972_v0 }
 0x4a6   :  { %v978_v9 = vpop.xlane.xlu1 %977  ;;  %3090 = vrcp.f32 %v999_v42 }
 0x4a7   :  { %3092 = vrcp.f32 %v966_v35 }
 0x4a8   :  { %3094 = vrcp.f32 %v978_v9 }
 0x4aa   :  { %v981_v56 = vpop.xlane.xlu0 %980 }
 0x4ad   :  { %v3085_v23 = vpop.eup %3084 }
 0x4ae   :  { %v984_v62 = vpop.xlane.xlu1 %983  ;;  %v3087_v2 = vpop.eup %3086  ;;  %v1031_v7 = vmul.f32 %v3085_v23, %v3743_v6 }
 0x4af   :  { %3096 = vrcp.f32 %v984_v62  ;;  %v3089_v36 = vpop.eup %3088  ;;  %v1029_v55 = vmul.f32 %v3087_v2, %v3728_v22  ;;  %v1038_v22 = vmul.f32 %v3083_v28, %v3710_v27 }
 0x4b0   :  { %3098 = vrcp.f32 %v990_v29  ;;  %v3091_v17 = vpop.eup %3090  ;;  %v1030_v37 = vmul.f32 %v3089_v36, %v3738_v1  ;;  %v1079_v29 = vunpack.c.l.s4 %v3222_v25 }
 0x4b1   :  { %3100 = vrcp.f32 %v981_v56  ;;  %v3093_v10 = vpop.eup %3092  ;;  %v1039_v59 = vmul.f32 %v3091_v17, %v3715_v38  ;;  %v1052_v45 = vcombine.low %v1029_v55, %v1031_v7 }
 0x4b2   :  { %v987_v5 = vpop.xlane.xlu0 %986  ;;  %v3095_v43 = vpop.eup %3094  ;;  %v1028_v24 = vmul.f32 %v3093_v10, %v3731_v49  ;;  %v1080_v60 = vunpack.c.0.s8 %v1079_v29  ;;  %v1316_v29 = vld [vmem:[#allocation2 + $0x68] sm:$0xff] }
 0x4b3   :  { %3102 = vrcp.f32 %v987_v5  ;;  %v1032_v1 = vmul.f32 %v3095_v43, %v3749_v21  ;;  %v1059_v11 = vrot.slane %v1052_v45, %v3778_v39 }
 0x4b4   :  { %3104 = vrcp.f32 %v1005_v34  ;;  %v1044_v42 = vcombine.low %v1028_v24, %v1030_v37  ;;  %v1120_v34 = vcombine.low %v1037_v33, %v1039_v59  ;;  %v3795_v51 = vsub.s32 %v1080_v60, %v3273_v46  ;;  %v1317_v33 = vld [vmem:[#allocation2 + $0x70] sm:$0xff] }
 0x4b5   :  { %3106 = vrcp.f32 %v1002_v18 }
 0x4b6   :  { %v1011_v32 = vpop.xlane.xlu0 %1010  ;;  %v1008_v8 = vpop.xlane.xlu1 %1007  ;;  %v1051_v27 = vrot.slane %v1044_v42, %v3778_v39  ;;  %v1319_v42 = vld [vmem:[#allocation2 + $0x80] sm:$0xff] }
 0x4b7   :  { %3108 = vrcp.f32 %v1011_v32 }
 0x4b8   :  { %3110 = vrcp.f32 %v1008_v8  ;;  %v1076_v5 = vcombine.low %v1051_v27, %v1059_v11 }
 0x4b9   :  { %v3097_v44 = vpop.eup %3096 }
 0x4ba   :  { %v3099_v31 = vpop.eup %3098  ;;  %v1034_v30 = vmul.f32 %v3097_v44, %v3073_v20  ;;  %v1084_v32 = vrot.slane %v1076_v5, %v3795_v51  ;;  %v1322_v5 = vld [vmem:[#allocation2 + $0x98] sm:$0xff] }
 0x4bb   :  { %v3101_v6 = vpop.eup %3100  ;;  %v1036_v38 = vmul.f32 %v3099_v31, %v3700_v19  ;;  %v1127_v19 = vrot.slane %v1120_v34, %v3778_v39  ;;  %v1077_v31 = vcombine.high %v1051_v27, %v1059_v11 }
 0x4bc   :  { %v1033_v20 = vmul.f32 %v3101_v6, %v3754_v15  ;;  %v1060_v3 = vcombine.low %v1032_v1, %v1034_v30  ;;  %v2969_v1 = vpack.c.bf16 %v1317_v33, %v1316_v29  ;;  %v3186_v33 = vld [vmem:[#allocation2 + $0x178] sm:$0xff] }
 0x4bd   :  { %v3103_v18 = vpop.eup %3102  ;;  %v1112_v9 = vcombine.low %v1036_v38, %v1038_v22  ;;  %v1091_v25 = vrot.slane %v1077_v31, %v3795_v51  ;;  %v1318_v22 = vld [vmem:[#allocation2 + $0x78] sm:$0xff] }
 0x4be   :  { %v3105_v49 = vpop.eup %3104  ;;  %v1035_v35 = vmul.f32 %v3103_v18, %v3759_v41  ;;  %v1067_v15 = vrot.slane %v1060_v3, %v3778_v39  ;;  %v2973_v34 = vpack.c.bf16 %v1319_v42, %v1318_v22  ;;  %2970 = vmatprep.subr.bf16.mxu0 %v2969_v1 }
 0x4bf   :  { %v3107_v0 = vpop.eup %3106  ;;  %v1041_v62 = vmul.f32 %v3105_v49, %v3719_v16  ;;  %v1119_v50 = vrot.slane %v1112_v9, %v3778_v39  ;;  %v1320_v49 = vld [vmem:[#allocation2 + $0x88] sm:$0xff]  ;;  %2972 = vmatpush3.bf16.msra.mxu0 %v2969_v1 }
 0x4c0   :  { %v1068_v56 = vcombine.low %v1033_v20, %v1035_v35  ;;  %v1040_v23 = vmul.f32 %v3107_v0, %v3722_v52  ;;  %v1321_v20 = vld [vmem:[#allocation2 + $0x90] sm:$0xff]  ;;  %2974 = vmatprep.subr.bf16.mxu0 %v2973_v34  ;;  %v3187_v1 = vld [vmem:[#allocation2 + $0x188] sm:$0xff] }
 0x4c1   :  { %v3109_v21 = vpop.eup %3108  ;;  %v1144_v52 = vcombine.low %v1119_v50, %v1127_v19  ;;  %v2977_v11 = vpack.c.bf16 %v1321_v20, %v1320_v49  ;;  %v3190_v20 = vld [vmem:[#allocation2 + $0x170] sm:$0xff] }
 0x4c2   :  { %v3111_v63 = vpop.eup %3110  ;;  %v1043_v28 = vmul.f32 %v3109_v21, %v3763_v40  ;;  %v1075_v41 = vrot.slane %v1068_v56, %v3778_v39  ;;  %v1145_v40 = vcombine.high %v1119_v50, %v1127_v19  ;;  %v1405_v50 = vld [vmem:[#allocation2 + $0xa8] sm:$0xff] }
 0x4c3   :  { %v1042_v2 = vmul.f32 %v3111_v63, %v3765_v26  ;;  %v1152_v44 = vrot.slane %v1144_v52, %v3795_v51  ;;  %2976 = vmatpush3.bf16.msra.mxu0 %v2973_v34  ;;  %v1411_v52 = vld [vmem:[#allocation2 + $0xd8] sm:$0xff]  ;;  %v3189_v34 = vld [vmem:[#allocation2 + $0x160] sm:$0xff] }
 0x4c4   :  { %v1136_v16 = vcombine.low %v1041_v62, %v1043_v28  ;;  %v1092_v36 = vcombine.low %v1067_v15, %v1075_v41  ;;  %v1093_v46 = vcombine.high %v1067_v15, %v1075_v41  ;;  %v1159_v55 = vrot.slane %v1145_v40, %v3795_v51  ;;  %2978 = vmatprep.subr.bf16.mxu0 %v2977_v11 }
 0x4c5   :  { %v1128_v17 = vcombine.low %v1040_v23, %v1042_v2  ;;  %v1323_v23 = vld [vmem:[#allocation2 + $0xa0] sm:$0xff] }
 0x4c6   :  { %v1143_v7 = vrot.slane %v1136_v16, %v3778_v39  ;;  %v1100_v8 = vrot.slane %v1092_v36, %v3795_v51  ;;  %v1107_v45 = vrot.slane %v1093_v46, %v3795_v51  ;;  %v2981_v2 = vpack.c.bf16 %v1323_v23, %v1322_v5  ;;  %v1406_v16 = vld [vmem:[#allocation2 + $0xb0] sm:$0xff]  ;;  %v1407_v36 = vld [vmem:[#allocation2 + $0xb8] sm:$0xff] }
 0x4c7   :  { %v1135_v10 = vrot.slane %v1128_v17, %v3778_v39  ;;  %2980 = vmatpush3.bf16.msra.mxu0 %v2977_v11  ;;  %v2985_v17 = vpack.c.bf16 %v1406_v16, %v1405_v50  ;;  %v3191_v11 = vld [vmem:[#allocation2 + $0x180] sm:$0xff] }
 0x4c8   :  { %v1108_v43 = vcombine.low %v1084_v32, %v1100_v8  ;;  %v1109_v18 = vcombine.high %v1084_v32, %v1100_v8  ;;  %v1111_v38 = vcombine.high %v1091_v25, %v1107_v45  ;;  %v1110_v35 = vcombine.low %v1091_v25, %v1107_v45  ;;  %2982 = vmatprep.subr.bf16.mxu0 %v2981_v2  ;;  %v1409_v32 = vld [vmem:[#allocation2 + $0xc8] sm:$0xff]  ;;  %v1410_v8 = vld [vmem:[#allocation2 + $0xd0] sm:$0xff]  ;;  %v3184_v45 = vld [vmem:[#allocation2 + $0x158] sm:$0xff] }
 0x4c9   :  { %v1161_v26 = vcombine.high %v1135_v10, %v1143_v7  ;;  %v1160_v12 = vcombine.low %v1135_v10, %v1143_v7  ;;  %v1408_v7 = vld [vmem:[#allocation2 + $0xc0] sm:$0xff]  ;;  %2986 = vmatprep.subr.bf16.mxu1 %v2985_v17  ;;  %v2993_v10 = vpack.c.bf16 %v1410_v8, %v1409_v32  ;;  %v3185_v25 = vld [vmem:[#allocation2 + $0x168] sm:$0xff] }
 0x4ca   :  { %v2989_v40 = vpack.c.bf16 %v1408_v7, %v1407_v36 }
 0x4cb   :  { %v1175_v37 = vrot.slane %v1161_v26, %v3795_v51  ;;  %v1168_v59 = vrot.slane %v1160_v12, %v3795_v51  ;;  %2984 = vmatpush3.bf16.msra.mxu0 %v2981_v2  ;;  %v2711_v12 = vld [vmem:[#allocation2 + $0x60] ss:$0 sm:$0xff] }
 0x4cd   :  { %v1178_v24 = vcombine.low %v1159_v55, %v1175_v37  ;;  %v1177_v30 = vcombine.high %v1152_v44, %v1168_v59  ;;  %v1176_v6 = vcombine.low %v1152_v44, %v1168_v59  ;;  %v1179_v3 = vcombine.high %v1159_v55, %v1175_v37 }
 0x4cf   :  { %1192 = vrot.lane.b32.xlu1 %v1178_v24, %s3223_s0  ;;  %1184 = vrot.lane.b32.xlu0 %v1177_v30, %s3224_s9 }
 0x4d3   :  { %1182 = vrot.lane.b32.xlu1 %v1109_v18, %s3224_s9  ;;  %1198 = vrot.lane.b32.xlu0 %v1111_v38, %s3225_s10  ;;  %v3188_v18 = vld [vmem:[#allocation2 + $0x150] sm:$0xff] }
 0x4d7   :  { %1190 = vrot.lane.b32.xlu1 %v1110_v35, %s3223_s0 }
 0x4db   :  { %1200 = vrot.lane.b32.xlu1 %v1179_v3, %s3225_s10 }
 0x541   :  { %v1193_v0 = vpop.permute.xlu1 %1192  ;;  %v1185_v60 = vpop.permute.xlu0 %1184 }
 0x542   :  { %v1205_v21 = vsel %vm4388_vm15, %v1176_v6, %v1185_v60 }
 0x543   :  { %v1208_v15 = vsel %vm4340_vm2, %v1205_v21, %v1193_v0 }
 0x545   :  { %v1183_v9 = vpop.permute.xlu1 %1182  ;;  %v1199_v62 = vpop.permute.xlu0 %1198 }
 0x546   :  { %v1204_v27 = vsel %vm4387_vm14, %v1108_v43, %v1183_v9  ;;  %v1412_v43 = vld [vmem:[#allocation2 + $0xe0] sm:$0xff] }
 0x547   :  { %v2997_v26 = vpack.c.bf16 %v1412_v43, %v1411_v52 }
 0x549   :  { %v1191_v56 = vpop.permute.xlu1 %1190 }
 0x54a   :  { %v1207_v19 = vsel %vm4340_vm2, %v1204_v27, %v1191_v56 }
 0x54b   :  { %v1210_v63 = vsel %vm4339_vm12, %v1207_v19, %v1199_v62 }
 0x54c   :  { %2847 = vmatprep.mubr.msk.f32.mxu1 %vm4389_vm0, %v1210_v63 }
 0x54d   :  { %v1201_v28 = vpop.permute.xlu1 %1200 }
 0x54e   :  { %v1211_v41 = vsel %vm4339_vm12, %v1208_v15, %v1201_v28 }
 0x54f   :  { %2848 = vmatmul.mubr.msk.f32.vlgmr.msra.gmra.mrb[2].mxu1 %vm4390_vm3, %v1211_v41 }
 0x550   :  { %2988 = vmatpush3.bf16.msra.mxu1 %v2985_v17 }
 0x551   :  { %2990 = vmatprep.subr.bf16.mxu1 %v2989_v40 }
 0x554   :  { %2992 = vmatpush3.bf16.msra.mxu1 %v2989_v40 }
 0x555   :  { %2994 = vmatprep.subr.bf16.mxu1 %v2993_v10 }
 0x558   :  { %2996 = vmatpush3.bf16.msra.mxu1 %v2993_v10 }
 0x559   :  { %2998 = vmatprep.subr.bf16.mxu1 %v2997_v26 }
 0x55c   :  { %3000 = vmatpush3.bf16.msra.mxu1 %v2997_v26 }
 0x622   :  { %v2849_v46 = vpop.f32.mrb[2].mxu1 }
 0x623   :  { %v1311_v55 = vadd.f32 %v2849_v46, %v2711_v12  ;;  %v1305_v37 = vpop.f32.mrb[3].mxu1 }
 0x624   :  { %v1306_v44 = vadd.f32 %v2711_v12, %v1305_v37 }
 0x625   :  { %v1315_v31 = vmax.f32 %v1311_v55, 0.0 }
 0x626   :  { %v1314_v59 = vmax.f32 %v1306_v44, 0.0 }
 0x628   :  { %2866 = vmatprep.mubr.msk.f32.mxu0 %vm4391_vm4, %v1314_v59 }
 0x629   :  { %2867 = vmatmul.mubr.msk.f32.vlgmr.msra.gmra.mrb[4].mxu0 %vm4392_vm5, %v1315_v31 }
 0x6fc   :  { %v2868_v24 = vpop.f32.mrb[4].mxu0 }
 0x6fd   :  { %v1396_v30 = vpop.f32.mrb[5].mxu0  ;;  %v2407_v6 = vmul.f32 %v3184_v45, %v2868_v24  ;;  %v2409_v29 = vmul.f32 %v3185_v25, %v2868_v24  ;;  %v2411_v22 = vmul.f32 %v3186_v33, %v2868_v24  ;;  %v2413_v42 = vmul.f32 %v3187_v1, %v2868_v24 }
 0x6fe   :  { %2885 = vmatprep.mubr.msk.f32.mxu1 %vm4393_vm1, %v1396_v30  ;;  %v2406_v38 = vmul.f32 %v3188_v18, %v1396_v30  ;;  %v2408_v49 = vmul.f32 %v3189_v34, %v1396_v30  ;;  %v2410_v35 = vmul.f32 %v3190_v20, %v1396_v30  ;;  %v2412_v3 = vmul.f32 %v3191_v11, %v1396_v30 }
 0x6ff   :  { %2886 = vmatmul.mubr.msk.f32.vlgmr.msra.gmra.mrb[4].mxu1 %vm4394_vm6, %v2868_v24 }
 0x700   :  { %v3001_v0 = vpack.c.bf16 %v2407_v6, %v2406_v38  ;;  %v3005_v60 = vpack.c.bf16 %v2409_v29, %v2408_v49  ;;  %v3009_v9 = vpack.c.bf16 %v2411_v22, %v2410_v35  ;;  %v3013_v27 = vpack.c.bf16 %v2413_v42, %v2412_v3 }
 0x702   :  { %3002 = vmatprep.subr.bf16.mxu0 %v3001_v0 }
 0x703   :  { %3004 = vmatpush3.bf16.msra.mxu0 %v3001_v0 }
 0x704   :  { %3006 = vmatprep.subr.bf16.mxu0 %v3005_v60 }
 0x707   :  { %3008 = vmatpush3.bf16.msra.mxu0 %v3005_v60 }
 0x708   :  { %3010 = vmatprep.subr.bf16.mxu0 %v3009_v9 }
 0x70b   :  { %3012 = vmatpush3.bf16.msra.mxu0 %v3009_v9 }
 0x70c   :  { %3014 = vmatprep.subr.bf16.mxu0 %v3013_v27 }
 0x70f   :  { %3016 = vmatpush3.bf16.msra.mxu0 %v3013_v27 }
 0x7d2   :  { %v2887_v56 = vpop.f32.mrb[4].mxu1 }
 0x7d3   :  { %v1485_v21 = vpop.f32.mrb[5].mxu1  ;;  %v1601_v62 = vrot.slane %v2887_v56, %v3279_v48  ;;  %v1593_v19 = vrot.slane %v2887_v56, %v3276_v47  ;;  %v1617_v63 = vrot.slane %v2887_v56, %v3284_v53  ;;  %v1609_v28 = vrot.slane %v2887_v56, %v3287_v54 }
 0x7d4   :  { %v1633_v15 = vrot.slane %v2887_v56, %v3292_v57  ;;  %v1625_v41 = vrot.slane %v2887_v56, %v3295_v58  ;;  %v1641_v5 = vrot.slane %v2887_v56, %v3300_v61  ;;  %v1537_v23 = vrot.slane %v1485_v21, %v3279_v48 }
 0x7d5   :  { %1604 = vbcast.lane.b32.xlu1 %v1601_v62, 260  ;;  %1596 = vbcast.lane.b32.xlu0 %v1593_v19, 260  ;;  %v1553_v2 = vrot.slane %v1485_v21, %v3284_v53  ;;  %v1529_v50 = vrot.slane %v1485_v21, %v3276_v47  ;;  %v1569_v16 = vrot.slane %v1485_v21, %v3292_v57 }
 0x7d6   :  { %v1545_v36 = vrot.slane %v1485_v21, %v3287_v54  ;;  %v1585_v17 = vrot.slane %v1485_v21, %v3309_v4  ;;  %v1561_v7 = vrot.slane %v1485_v21, %v3295_v58  ;;  %v1649_v48 = vrot.slane %v2887_v56, %v3309_v4  ;;  %v1719_v54 = vld [vmem:[%s4333_s1 + $0x2] sm:$0x3]  ;;  %v1718_v58 = vld [vmem:[%s4333_s1] sm:$0x3] }
 0x7d7   :  { %v1577_v53 = vrot.slane %v1485_v21, %v3300_v61  ;;  %vm1721_vm7 = vnez %v1719_v54  ;;  %vm1720_vm9 = vnez %v1718_v58 }
 0x7d8   :  { %v1723_v57 = vsel %vm1721_vm7, 16843009, %v3220_v14  ;;  %v1722_v61 = vsel %vm1720_vm9, 16843009, %v3220_v14 }
 0x7d9   :  { %1620 = vbcast.lane.b32.xlu1 %v1617_v63, 260  ;;  %1612 = vbcast.lane.b32.xlu0 %v1609_v28, 260  ;;  %v1738_v40 = vrot.slane %v1723_v57, %v3319_v13  ;;  %v3855_v8 = vrot.slane %v1722_v61, %v3319_v13 }
 0x7db   :  { %v3850_v4 = vcombine.high %v1738_v40, %v1738_v40  ;;  %v1761_v10 = vshrl.u32 %v1738_v40, 8  ;;  %v1743_v52 = vshrl.u32 %v3855_v8, 8  ;;  %v1792_v26 = vpack.c.b16 %v1738_v40, %v1738_v40 }
 0x7dc   :  { %v1763_v55 = vshrl.u32 %v1738_v40, 16  ;;  %v1765_v30 = vshrl.u32 %v1738_v40, 24  ;;  %v1776_v60 = vpack.c.b16 %v3855_v8, %v3855_v8  ;;  %v1745_v27 = vshrl.u32 %v3855_v8, 16 }
 0x7dd   :  { %1636 = vbcast.lane.b32.xlu1 %v1633_v15, 260  ;;  %1628 = vbcast.lane.b32.xlu0 %v1625_v41, 260  ;;  %v1770_v32 = vshrl.u32 %v3850_v4, 8  ;;  %v1794_v12 = vpack.c.b16 %v1761_v10, %v1761_v10  ;;  %v1778_v46 = vpack.c.b16 %v1743_v52, %v1743_v52  ;;  %v1793_v44 = vpack.c.b8 %v1792_v26, %v1792_v26 }
 0x7de   :  { %v1774_v24 = vshrl.u32 %v3850_v4, 24  ;;  %v1796_v45 = vpack.c.b16 %v1763_v55, %v1763_v55  ;;  %v1798_v25 = vpack.c.b16 %v1765_v30, %v1765_v30  ;;  %v1800_v29 = vpack.c.b16 %v3850_v4, %v3850_v4 }
 0x7df   :  { %v1802_v43 = vpack.c.b16 %v1770_v32, %v1770_v32  ;;  %v1795_v59 = vpack.c.b8 %v1794_v12, %v1794_v12  ;;  %v1779_v31 = vpack.c.b8 %v1778_v46, %v1778_v46  ;;  %vm1816_vm13 = vnez %v1793_v44 }
 0x7e0   :  { %v1806_v13 = vpack.c.b16 %v1774_v24, %v1774_v24  ;;  %v1797_v22 = vpack.c.b8 %v1796_v45, %v1796_v45  ;;  %v1832_v1 = vsel %vm1816_vm13, 16843009, %v3220_v14  ;;  %v1799_v20 = vpack.c.b8 %v1798_v25, %v1798_v25 }
 0x7e1   :  { %1644 = vbcast.lane.b32.xlu0 %v1641_v5, 260  ;;  %1540 = vbcast.lane.b32.xlu1 %v1537_v23, 260  ;;  %v1803_v37 = vpack.c.b8 %v1802_v43, %v1802_v43  ;;  %vm1817_vm8 = vnez %v1795_v59  ;;  %vm1809_vm14 = vnez %v1779_v31  ;;  %v1801_v35 = vpack.c.b8 %v1800_v29, %v1800_v29 }
 0x7e2   :  { %v1833_v42 = vsel %vm1817_vm8, 16843009, %v3220_v14  ;;  %v1825_v18 = vsel %vm1809_vm14, 16843009, %v3220_v14  ;;  %v1807_v49 = vpack.c.b8 %v1806_v13, %v1806_v13  ;;  %v1848_v3 = vunpack.c.0.s8 %v1832_v1 }
 0x7e3   :  { %vm1821_vm11 = vnez %v1803_v37  ;;  %v1849_v0 = vunpack.c.0.s8 %v1833_v42  ;;  %vm1818_vm15 = vnez %v1797_v22  ;;  %v1841_v9 = vunpack.c.0.s8 %v1825_v18 }
 0x7e4   :  { %v1837_v33 = vsel %vm1821_vm11, 16843009, %v3220_v14  ;;  %vm1823_vm0 = vnez %v1807_v49  ;;  %vm1819_vm3 = vnez %v1799_v20  ;;  %v1872_v62 = vpack.i.b16 %v1848_v3, %v1848_v3 }
 0x7e5   :  { %1556 = vbcast.lane.b32.xlu1 %v1553_v2, 260  ;;  %1532 = vbcast.lane.b32.xlu0 %v1529_v50, 260  ;;  %v1853_v34 = vunpack.c.0.s8 %v1837_v33  ;;  %v1874_v19 = vpack.i.b16 %v1849_v0, %v1849_v0  ;;  %vm1820_vm4 = vnez %v1801_v35  ;;  %v1777_v63 = vpack.c.b8 %v1776_v60, %v1776_v60 }
 0x7e6   :  { %v1858_v15 = vpack.i.b16 %v1841_v9, %v1841_v9  ;;  %v1747_v41 = vshrl.u32 %v3855_v8, 24  ;;  %v1839_v23 = vsel %vm1823_vm0, 16843009, %v3220_v14  ;;  %v1835_v2 = vsel %vm1819_vm3, 16843009, %v3220_v14 }
 0x7e7   :  { %v1780_v50 = vpack.c.b16 %v1745_v27, %v1745_v27  ;;  %vm1808_vm5 = vnez %v1777_v63  ;;  %v1855_v54 = vunpack.c.0.s8 %v1839_v23  ;;  %v1851_v57 = vunpack.c.0.s8 %v1835_v2 }
 0x7e8   :  { %v1782_v58 = vpack.c.b16 %v1747_v41, %v1747_v41  ;;  %v1824_v10 = vsel %vm1808_vm5, 16843009, %v3220_v14  ;;  %v3888_v52 = vcombine.high %v3855_v8, %v3855_v8 }
 0x7e9   :  { %1572 = vbcast.lane.b32.xlu1 %v1569_v16, 260  ;;  %1548 = vbcast.lane.b32.xlu0 %v1545_v36, 260  ;;  %v1836_v36 = vsel %vm1820_vm4, 16843009, %v3220_v14  ;;  %v1781_v61 = vpack.c.b8 %v1780_v50, %v1780_v50  ;;  %v1886_v12 = vpack.i.b16 %v1855_v54, %v1855_v54  ;;  %v1878_v46 = vpack.i.b16 %v1851_v57, %v1851_v57 }
 0x7ea   :  { %v1852_v40 = vunpack.c.0.s8 %v1836_v36  ;;  %v1783_v55 = vpack.c.b8 %v1782_v58, %v1782_v58  ;;  %v1840_v44 = vunpack.c.0.s8 %v1824_v10  ;;  %v1784_v59 = vpack.c.b16 %v3888_v52, %v3888_v52 }
 0x7eb   :  { %vm1810_vm11 = vnez %v1781_v61  ;;  %v1887_v25 = vpack.i.b8 %v1886_v12, %v1886_v12  ;;  %v1879_v29 = vpack.i.b8 %v1878_v46, %v1878_v46  ;;  %v1754_v36 = vshrl.u32 %v3888_v52, 16 }
 0x7ec   :  { %v1880_v37 = vpack.i.b16 %v1852_v40, %v1852_v40  ;;  %v1826_v33 = vsel %vm1810_vm11, 16843009, %v3220_v14  ;;  %vm1811_vm13 = vnez %v1783_v55  ;;  %v1856_v42 = vpack.i.b16 %v1840_v44, %v1840_v44 }
 0x7ed   :  { %1588 = vbcast.lane.b32.xlu1 %v1585_v17, 260  ;;  %1564 = vbcast.lane.b32.xlu0 %v1561_v7, 260  ;;  %v1873_v7 = vpack.i.b8 %v1872_v62, %v1872_v62  ;;  %v1785_v18 = vpack.c.b8 %v1784_v59, %v1784_v59  ;;  %v1842_v3 = vunpack.c.0.s8 %v1826_v33  ;;  %v1827_v0 = vsel %vm1811_vm13, 16843009, %v3220_v14 }
 0x7ee   :  { %v1881_v1 = vpack.i.b8 %v1880_v37, %v1880_v37  ;;  %vm1903_vm14 = vnez %v1887_v25  ;;  %v1857_v9 = vpack.i.b8 %v1856_v42, %v1856_v42  ;;  %v1843_v62 = vunpack.c.0.s8 %v1827_v0 }
 0x7ef   :  { %vm1896_vm6 = vnez %v1873_v7  ;;  %vm1812_vm3 = vnez %v1785_v18  ;;  %v1860_v23 = vpack.i.b16 %v1842_v3, %v1842_v3  ;;  %v1788_v37 = vpack.c.b16 %v1754_v36, %v1754_v36 }
 0x7f0   :  { %v1912_v8 = vsel %vm1896_vm6, 16843009, %v3220_v14  ;;  %vm1900_vm0 = vnez %v1881_v1  ;;  %v1862_v58 = vpack.i.b16 %v1843_v62, %v1843_v62 }
 0x7f1   :  { %1652 = vbcast.lane.b32.xlu1 %v1649_v48, 260  ;;  %1580 = vbcast.lane.b32.xlu0 %v1577_v53, 260  ;;  %v1875_v48 = vpack.i.b8 %v1874_v19, %v1874_v19  ;;  %v1859_v53 = vpack.i.b8 %v1858_v15, %v1858_v15  ;;  %v1928_v20 = vunpack.c.0.s8 %v1912_v8  ;;  %v1919_v15 = vsel %vm1903_vm14, 16843009, %v3220_v14 }
 0x7f2   :  { %v1916_v50 = vsel %vm1900_vm0, 16843009, %v3220_v14  ;;  %v1935_v54 = vunpack.c.0.s8 %v1919_v15  ;;  %v1861_v61 = vpack.i.b8 %v1860_v23, %v1860_v23  ;;  %v1756_v8 = vshrl.u32 %v3888_v52, 24 }
 0x7f3   :  { %vm1897_vm7 = vnez %v1875_v48  ;;  %vm1889_vm9 = vnez %v1859_v53  ;;  %vm3907_vm5 = vcmp.ne.s32.totalorder %v1928_v20, 0  ;;  %v1932_v40 = vunpack.c.0.s8 %v1916_v50 }
 0x7f4   :  { %v1913_v24 = vsel %vm1897_vm7, 16843009, %v3220_v14  ;;  %v1905_v30 = vsel %vm1889_vm9, 16843009, %v3220_v14  ;;  %vm1888_vm7 = vnez %v1857_v9  ;;  %v1960_v12 = vsel %vm3907_vm5, 1, %v3220_v14 }
 0x7f5   :  { %v1929_v35 = vunpack.c.0.s8 %v1913_v24  ;;  %v1921_v60 = vunpack.c.0.s8 %v1905_v30  ;;  %v1904_v55 = vsel %vm1888_vm7, 16843009, %v3220_v14  ;;  %vm1951_vm13 = vcmp.ne.s32.totalorder %v1935_v54, 0 }
 0x7f6   :  { %v1863_v30 = vpack.i.b8 %v1862_v58, %v1862_v58  ;;  %vm1948_vm14 = vcmp.ne.s32.totalorder %v1932_v40, 0  ;;  %v1789_v42 = vpack.c.b8 %v1788_v37, %v1788_v37 }
 0x7f7   :  { %vm3924_vm6 = vcmp.ne.s32.totalorder %v1921_v60, 0  ;;  %v3964_v0 = vsel %vm1948_vm14, 1, %v3220_v14 }
 0x7f8   :  { %v2019_v36 = vrot.slane %v3964_v0, %v3276_v47 }
 0x80f   :  { %1494 = vxpose.xlu0.b32.start [1/2] (short) (narrow) %v1485_v21, 8  ;;  %v1834_v21 = vsel %vm1818_vm15, 16843009, %v3220_v14  ;;  %vm1899_vm15 = vnez %v1879_v29  ;;  %v2003_v29 = vrot.slane %v1960_v12, %v3276_v47 }
 0x810   :  { %v1850_v16 = vunpack.c.0.s8 %v1834_v21  ;;  %v1915_v41 = vsel %vm1899_vm15, 16843009, %v3220_v14  ;;  %vm1890_vm15 = vnez %v1861_v61 }
 0x811   :  { %v1931_v57 = vunpack.c.0.s8 %v1915_v41  ;;  %v1906_v60 = vsel %vm1890_vm15, 16843009, %v3220_v14  ;;  %vm3974_vm5 = vcmp.eq.s32.totalorder %v2003_v29, 1 }
 0x812   :  { %v1876_v26 = vpack.i.b16 %v1850_v16, %v1850_v16  ;;  %v1828_v16 = vsel %vm1812_vm3, 16843009, %v3220_v14  ;;  %vm3967_vm3 = vnez %v1863_v30  ;;  %v1922_v7 = vunpack.c.0.s8 %v1906_v60 }
 0x813   :  { %1495 = vxpose.xlu0.b32.end [2/2] (short) (narrow) %v2887_v56, 8  ;;  %v1882_v56 = vpack.i.b16 %v1853_v34, %v1853_v34  ;;  %v1752_v34 = vshrl.u32 %v3888_v52, 8  ;;  %v1844_v10 = vunpack.c.0.s8 %v1828_v16 }
 0x814   :  { %v1877_v45 = vpack.i.b8 %v1876_v26, %v1876_v26 }
 0x815   :  { %v1883_v17 = vpack.i.b8 %v1882_v56, %v1882_v56  ;;  %v1786_v27 = vpack.c.b16 %v1752_v34, %v1752_v34  ;;  %v1864_v25 = vpack.i.b16 %v1844_v10, %v1844_v10  ;;  %v1967_v34 = vsel %vm1951_vm13, 1, %v3220_v14 }
 0x816   :  { %vm1898_vm8 = vnez %v1877_v45  ;;  %v1920_v45 = vunpack.c.0.s8 %v1904_v55  ;;  %v2031_v23 = vrot.slane %v1967_v34, %v3276_v47 }
 0x817   :  { %vm1901_vm1 = vnez %v1883_v17  ;;  %v1914_v63 = vsel %vm1898_vm8, 16843009, %v3220_v14  ;;  %v1787_v48 = vpack.c.b8 %v1786_v27, %v1786_v27  ;;  %vm3944_vm8 = vcmp.ne.s32.totalorder %v1931_v57, 0 }
 0x818   :  { %v1917_v31 = vsel %vm1901_vm1, 16843009, %v3220_v14  ;;  %vm3916_vm1 = vcmp.ne.s32.totalorder %v1929_v35, 0  ;;  %v1930_v53 = vunpack.c.0.s8 %v1914_v63  ;;  %v1963_v3 = vsel %vm3944_vm8, 1, %v3220_v14 }
 0x819   :  { %v1933_v49 = vunpack.c.0.s8 %v1917_v31  ;;  %v1961_v46 = vsel %vm3916_vm1, 1, %v3220_v14  ;;  %v1953_v31 = vsel %vm3924_vm6, 1, %v3220_v14  ;;  %vm1813_vm9 = vnez %v1787_v48 }
 0x81a   :  { %vm1946_vm11 = vcmp.ne.s32.totalorder %v1930_v53, 0  ;;  %v2007_v33 = vrot.slane %v1961_v46, %v3276_v47  ;;  %v1829_v1 = vsel %vm1813_vm9, 16843009, %v3220_v14  ;;  %v1975_v52 = vrot.slane %v1953_v31, %v3276_v47 }
 0x81b   :  { %vm1949_vm4 = vcmp.ne.s32.totalorder %v1933_v49, 0  ;;  %v1962_v18 = vsel %vm1946_vm11, 1, %v3220_v14  ;;  %v1790_v49 = vpack.c.b16 %v1756_v8, %v1756_v8  ;;  %v1865_v21 = vpack.i.b8 %v1864_v25, %v1864_v25 }
 0x81c   :  { %v1965_v17 = vsel %vm1949_vm4, 1, %v3220_v14  ;;  %vm1936_vm4 = vcmp.ne.s32.totalorder %v1920_v45, 0  ;;  %v1845_v62 = vunpack.c.0.s8 %v1829_v1  ;;  %v1772_v63 = vshrl.u32 %v3850_v4, 16 }
 0x81d   :  { %v2023_v59 = vrot.slane %v1965_v17, %v3276_v47  ;;  %v2011_v41 = vrot.slane %v1962_v18, %v3276_v47  ;;  %vm1814_vm1 = vnez %v1789_v42  ;;  %vm3980_vm6 = vcmp.eq.s32.totalorder %v2007_v33, 1 }
 0x81e   :  { %vm3984_vm7 = vcmp.eq.s32.totalorder %v1975_v52, 1  ;;  %v2015_v16 = vrot.slane %v1963_v3, %v3276_v47  ;;  %v1791_v4 = vpack.c.b8 %v1790_v49, %v1790_v49  ;;  %v3992_v17 = vsel %vm1936_vm4, 1, %v3220_v14 }
 0x81f   :  { %vm3956_vm0 = vcmp.eq.s32.totalorder %v2023_v59, 1  ;;  %v3997_v48 = vsel %vm3967_vm3, 16843009, %v3220_v14  ;;  %vm4001_vm9 = vnez %v1865_v21  ;;  %v4005_v57 = vpack.i.b16 %v1845_v62, %v1845_v62 }
 0x820   :  { %v1830_v58 = vsel %vm1814_vm1, 16843009, %v3220_v14  ;;  %v1804_v40 = vpack.c.b16 %v1772_v63, %v1772_v63  ;;  %vm4016_vm11 = vcmp.eq.s32.totalorder %v2011_v41, 1  ;;  %vm4020_vm13 = vcmp.eq.s32.totalorder %v2031_v23, 1 }
 0x821   :  { %vm4029_vm8 = vnez %v1791_v4  ;;  %vm4033_vm3 = vcmp.ne.s32.totalorder %v1922_v7, 0  ;;  %vm4037_vm2 = vcmp.eq.s32.totalorder %v2015_v16, 1  ;;  %v1867_v49 = vpack.i.b8 %v4005_v57, %v4005_v57 }
 0x822   :  { %v1805_v3 = vpack.c.b8 %v1804_v40, %v1804_v40  ;;  %v1846_v60 = vunpack.c.0.s8 %v1830_v58  ;;  %v1831_v15 = vsel %vm4029_vm8, 16843009, %v3220_v14  ;;  %v1923_v23 = vunpack.c.0.s8 %v3997_v48 }
 0x823   :  { %v1908_v2 = vsel %vm4001_vm9, 16843009, %v3220_v14  ;;  %v1847_v48 = vunpack.c.0.s8 %v1831_v15  ;;  %v1971_v40 = vrot.slane %v3992_v17, %v3276_v47 }
 0x824   :  { %v1868_v7 = vpack.i.b16 %v1846_v60, %v1846_v60 }
 0x825   :  { %vm4115_vm8 = vcmp.eq.s32.totalorder %v1971_v40, 1 }
 0x826   :  { %v1869_v59 = vpack.i.b8 %v1868_v7, %v1868_v7 }
 0x847   :  { %v3859_v6 = vpop.permute.xlu0 %1596  ;;  %v3867_v38 = vpop.permute.xlu1 %1604 }
 0x84b   :  { %v3869_v11 = vpop.permute.xlu0 %1612  ;;  %v3875_v28 = vpop.permute.xlu1 %1620 }
 0x84f   :  { %v3878_v5 = vpop.permute.xlu0 %1628  ;;  %v3883_v32 = vpop.permute.xlu1 %1636 }
 0x853   :  { %v3890_v43 = vpop.permute.xlu0 %1644  ;;  %v3898_v13 = vpop.permute.xlu1 %1540 }
 0x857   :  { %v3901_v22 = vpop.permute.xlu0 %1532  ;;  %v3905_v56 = vpop.permute.xlu1 %1556 }
 0x85b   :  { %v3911_v19 = vpop.permute.xlu0 %1548  ;;  %v3928_v26 = vpop.permute.xlu1 %1572 }
 0x85f   :  { %v3937_v44 = vpop.permute.xlu0 %1564  ;;  %v3954_v20 = vpop.permute.xlu1 %1588 }
 0x863   :  { %v3971_v27 = vpop.permute.xlu0 %1580  ;;  %v1653_v61 = vpop.permute.xlu1 %1652 }
 0x88f   :  { %v3999_v53 = vpop.trf.xlu0 }
 0x890   :  { %v1667_v10 = vadd.f32 %v3883_v32, %v3999_v53  ;;  %v1662_v12 = vadd.f32 %v3859_v6, %v3999_v53  ;;  %v1663_v46 = vadd.f32 %v3867_v38, %v3999_v53  ;;  %v1655_v55 = vadd.f32 %v3898_v13, %v3999_v53 }
 0x891   :  { %v1664_v32 = vadd.f32 %v3869_v11, %v3999_v53  ;;  %v1669_v31 = vadd.f32 %v1653_v61, %v3999_v53  ;;  %v1665_v6 = vadd.f32 %v3875_v28, %v3999_v53  ;;  %v1666_v62 = vadd.f32 %v3878_v5, %v3999_v53 }
 0x892   :  { %vm1683_vm14 = vcmp.ge.f32.partialorder %v1667_v10, 0.0  ;;  %v1699_v13 = vmul.f32 0.2, %v1667_v10  ;;  %vm1678_vm15 = vcmp.ge.f32.partialorder %v1662_v12, 0.0  ;;  %v1694_v8 = vmul.f32 0.2, %v1662_v12 }
 0x893   :  { %vm1679_vm4 = vcmp.ge.f32.partialorder %v1663_v46, 0.0  ;;  %v1695_v30 = vmul.f32 0.2, %v1663_v46  ;;  %vm1671_vm1 = vcmp.ge.f32.partialorder %v1655_v55, 0.0  ;;  %v1687_v11 = vmul.f32 0.2, %v1655_v55 }
 0x894   :  { %v1715_v45 = vsel %vm1683_vm14, %v1667_v10, %v1699_v13  ;;  %v1710_v25 = vsel %vm1678_vm15, %v1662_v12, %v1694_v8  ;;  %vm1680_vm12 = vcmp.ge.f32.partialorder %v1664_v32, 0.0  ;;  %v1696_v28 = vmul.f32 0.2, %v1664_v32 }
 0x895   :  { %v4043_v33 = vsel %vm3956_vm0, %v1715_v45, -1e+30  ;;  %v4047_v1 = vsel %vm3974_vm5, %v1710_v25, -1e+30  ;;  %v1711_v42 = vsel %vm1679_vm4, %v1663_v46, %v1695_v30  ;;  %v1703_v52 = vsel %vm1671_vm1, %v1655_v55, %v1687_v11 }
 0x896   :  { %v2103_v18 = vsel %vm867_vm10, %v4043_v33, -inf  ;;  %v2088_v34 = vsel %vm867_vm10, %v4047_v1, -inf  ;;  %v4057_v35 = vsel %vm3980_vm6, %v1711_v42, -1e+30  ;;  %v4061_v0 = vsel %vm3984_vm7, %v1703_v52, -1e+30 }
 0x897   :  { %2104 = vmax.xlane.f32.xlu0 %v2103_v18  ;;  %2089 = vmax.xlane.f32.xlu1 %v2088_v34  ;;  %vm1685_vm0 = vcmp.ge.f32.partialorder %v1669_v31, 0.0  ;;  %v1712_v9 = vsel %vm1680_vm12, %v1664_v32, %v1696_v28  ;;  %v1701_v21 = vmul.f32 0.2, %v1669_v31  ;;  %vm4066_vm5 = vcmp.eq.s32.totalorder %v2019_v36, 1 }
 0x898   :  { %vm1681_vm6 = vcmp.ge.f32.partialorder %v1665_v6, 0.0  ;;  %v1697_v41 = vmul.f32 0.2, %v1665_v6  ;;  %v2091_v50 = vsel %vm867_vm10, %v4057_v35, -inf  ;;  %v2067_v5 = vsel %vm867_vm10, %v4061_v0, -inf }
 0x899   :  { %v1717_v16 = vsel %vm1685_vm0, %v1669_v31, %v1701_v21  ;;  %vm1822_vm12 = vnez %v1805_v3  ;;  %v4083_v4 = vsel %vm4016_vm11, %v1712_v9, -1e+30  ;;  %v1698_v57 = vmul.f32 0.2, %v1666_v62 }
 0x89a   :  { %v4087_v36 = vsel %vm4020_vm13, %v1717_v16, -1e+30  ;;  %v1713_v54 = vsel %vm1681_vm6, %v1665_v6, %v1697_v41  ;;  %v1654_v58 = vadd.f32 %v3901_v22, %v3999_v53  ;;  %vm1893_vm7 = vnez %v1867_v49 }
 0x89b   :  { %2092 = vmax.xlane.f32.xlu1 %v2091_v50  ;;  %2068 = vmax.xlane.f32.xlu0 %v2067_v5  ;;  %vm1682_vm9 = vcmp.ge.f32.partialorder %v1666_v62, 0.0  ;;  %v1954_v61 = vsel %vm4033_vm3, 1, %v3220_v14  ;;  %v1838_v10 = vsel %vm1822_vm12, 16843009, %v3220_v14  ;;  %v2094_v12 = vsel %vm867_vm10, %v4083_v4, -inf }
 0x89c   :  { %v2109_v46 = vsel %vm867_vm10, %v4087_v36, -inf  ;;  %vm4101_vm11 = vcmp.ne.s32.totalorder %v1923_v23, 0  ;;  %v1924_v22 = vunpack.c.0.s8 %v1908_v2  ;;  %v4107_v17 = vsel %vm4037_vm2, %v1713_v54, -1e+30 }
 0x89d   :  { %v1909_v37 = vsel %vm1893_vm7, 16843009, %v3220_v14  ;;  %v1870_v32 = vpack.i.b16 %v1847_v48, %v1847_v48  ;;  %v1714_v31 = vsel %vm1682_vm9, %v1666_v62, %v1698_v57  ;;  %v1686_v6 = vmul.f32 0.2, %v1654_v58 }
 0x89e   :  { %v1656_v38 = vadd.f32 %v3911_v19, %v3999_v53  ;;  %v1854_v13 = vunpack.c.0.s8 %v1838_v10  ;;  %vm1670_vm13 = vcmp.ge.f32.partialorder %v1654_v58, 0.0  ;;  %v1979_v8 = vrot.slane %v1954_v61, %v3276_v47 }
 0x89f   :  { %2095 = vmax.xlane.f32.xlu1 %v2094_v12  ;;  %2110 = vmax.xlane.f32.xlu0 %v2109_v46  ;;  %v2097_v24 = vsel %vm867_vm10, %v4107_v17, -inf  ;;  %v1955_v11 = vsel %vm4101_vm11, 1, %v3220_v14  ;;  %vm4122_vm2 = vcmp.ne.s32.totalorder %v1924_v22, 0  ;;  %v4128_v19 = vsel %vm4066_vm5, %v1714_v31, -1e+30 }
 0x8a0   :  { %v1925_v25 = vunpack.c.0.s8 %v1909_v37  ;;  %vm1894_vm14 = vnez %v1869_v59  ;;  %v1871_v28 = vpack.i.b8 %v1870_v32, %v1870_v32  ;;  %v1702_v29 = vsel %vm1670_vm13, %v1654_v58, %v1686_v6 }
 0x8a1   :  { %v1688_v42 = vmul.f32 0.2, %v1656_v38  ;;  %v1657_v52 = vadd.f32 %v3905_v56, %v3999_v53  ;;  %v1884_v18 = vpack.i.b16 %v1854_v13, %v1854_v13  ;;  %vm1672_vm15 = vcmp.ge.f32.partialorder %v1656_v38, 0.0 }
 0x8a2   :  { %v2100_v34 = vsel %vm867_vm10, %v4128_v19, -inf  ;;  %vm4134_vm3 = vcmp.eq.s32.totalorder %v1979_v8, 1  ;;  %v1983_v3 = vrot.slane %v1955_v11, %v3276_v47  ;;  %v1910_v60 = vsel %vm1894_vm14, 16843009, %v3220_v14 }
 0x8a3   :  { %2098 = vmax.xlane.f32.xlu1 %v2097_v24  ;;  %v4142_v9 = vsel %vm4115_vm8, %v1702_v29, -1e+30  ;;  %v1956_v56 = vsel %vm4122_vm2, 1, %v3220_v14  ;;  %vm1941_vm4 = vcmp.ne.s32.totalorder %v1925_v25, 0  ;;  %vm1895_vm1 = vnez %v1871_v28 }
 0x8a4   :  { %v1704_v21 = vsel %vm1672_vm15, %v1656_v38, %v1688_v42  ;;  %v1689_v62 = vmul.f32 0.2, %v1657_v52  ;;  %v1658_v63 = vadd.f32 %v3937_v44, %v3999_v53  ;;  %v1885_v15 = vpack.i.b8 %v1884_v18, %v1884_v18 }
 0x8a5   :  { %vm1673_vm0 = vcmp.ge.f32.partialorder %v1657_v52, 0.0  ;;  %v1926_v41 = vunpack.c.0.s8 %v1910_v60  ;;  %v2064_v23 = vsel %vm867_vm10, %v4142_v9, -inf  ;;  %vm2035_vm5 = vcmp.eq.s32.totalorder %v1983_v3, 1 }
 0x8a6   :  { %v4153_v2 = vsel %vm4134_vm3, %v1704_v21, -1e+30  ;;  %v1987_v50 = vrot.slane %v1956_v56, %v3276_v47  ;;  %v1957_v5 = vsel %vm1941_vm4, 1, %v3220_v14  ;;  %v1911_v16 = vsel %vm1895_vm1, 16843009, %v3220_v14 }
 0x8a7   :  { %2101 = vmax.xlane.f32.xlu1 %v2100_v34  ;;  %v1705_v7 = vsel %vm1673_vm0, %v1657_v52, %v1689_v62  ;;  %v1690_v44 = vmul.f32 0.2, %v1658_v63  ;;  %v1659_v48 = vadd.f32 %v3928_v26, %v3999_v53  ;;  %vm1902_vm6 = vnez %v1885_v15 }
 0x8a8   :  { %vm1674_vm12 = vcmp.ge.f32.partialorder %v1658_v63, 0.0  ;;  %vm1942_vm7 = vcmp.ne.s32.totalorder %v1926_v41, 0  ;;  %v2070_v54 = vsel %vm867_vm10, %v4153_v2, -inf  ;;  %v1927_v57 = vunpack.c.0.s8 %v1911_v16 }
 0x8a9   :  { %v4162_v58 = vsel %vm2035_vm5, %v1705_v7, -1e+30  ;;  %vm2036_vm9 = vcmp.eq.s32.totalorder %v1987_v50, 1  ;;  %v1991_v40 = vrot.slane %v1957_v5, %v3276_v47  ;;  %v1918_v61 = vsel %vm1902_vm6, 16843009, %v3220_v14 }
 0x8aa   :  { %v1706_v10 = vsel %vm1674_vm12, %v1658_v63, %v1690_v44  ;;  %v1691_v12 = vmul.f32 0.2, %v1659_v48  ;;  %v1660_v26 = vadd.f32 %v3971_v27, %v3999_v53  ;;  %v1958_v46 = vsel %vm1942_vm7, 1, %v3220_v14 }
 0x8ab   :  { %2065 = vmax.xlane.f32.xlu1 %v2064_v23  ;;  %vm1675_vm11 = vcmp.ge.f32.partialorder %v1659_v48, 0.0  ;;  %v2073_v55 = vsel %vm867_vm10, %v4162_v58, -inf  ;;  %vm1943_vm13 = vcmp.ne.s32.totalorder %v1927_v57, 0  ;;  %v1934_v22 = vunpack.c.0.s8 %v1918_v61 }
 0x8ac   :  { %v4171_v37 = vsel %vm2036_vm9, %v1706_v10, -1e+30  ;;  %v1995_v59 = vrot.slane %v1958_v46, %v3276_v47  ;;  %v1707_v32 = vsel %vm1675_vm11, %v1659_v48, %v1691_v12  ;;  %vm2037_vm8 = vcmp.eq.s32.totalorder %v1991_v40, 1 }
 0x8ad   :  { %v1692_v31 = vmul.f32 0.2, %v1660_v26  ;;  %v1661_v6 = vadd.f32 %v3954_v20, %v3999_v53  ;;  %vm1676_vm2 = vcmp.ge.f32.partialorder %v1660_v26, 0.0  ;;  %v1959_v27 = vsel %vm1943_vm13, 1, %v3220_v14 }
 0x8ae   :  { %v2076_v38 = vsel %vm867_vm10, %v4171_v37, -inf  ;;  %vm1950_vm14 = vcmp.ne.s32.totalorder %v1934_v22, 0  ;;  %v4179_v13 = vsel %vm2037_vm8, %v1707_v32, -1e+30  ;;  %vm2038_vm15 = vcmp.eq.s32.totalorder %v1995_v59, 1 }
 0x8af   :  { %2071 = vmax.xlane.f32.xlu1 %v2070_v54  ;;  %v1708_v8 = vsel %vm1676_vm2, %v1660_v26, %v1692_v31  ;;  %v1693_v24 = vmul.f32 0.2, %v1661_v6  ;;  %v1999_v30 = vrot.slane %v1959_v27, %v3276_v47  ;;  %v1668_v11 = vadd.f32 %v3890_v43, %v3999_v53 }
 0x8b0   :  { %vm1677_vm3 = vcmp.ge.f32.partialorder %v1661_v6, 0.0  ;;  %v1966_v20 = vsel %vm1950_vm14, 1, %v3220_v14  ;;  %v2079_v45 = vsel %vm867_vm10, %v4179_v13, -inf  ;;  %v4187_v25 = vsel %vm2038_vm15, %v1708_v8, -1e+30 }
 0x8b1   :  { %v1709_v28 = vsel %vm1677_vm3, %v1661_v6, %v1693_v24  ;;  %vm2039_vm4 = vcmp.eq.s32.totalorder %v1999_v30, 1  ;;  %v1700_v29 = vmul.f32 0.2, %v1668_v11  ;;  %v2027_v42 = vrot.slane %v1966_v20, %v3276_v47 }
 0x8b2   :  { %vm1684_vm1 = vcmp.ge.f32.partialorder %v1668_v11, 0.0  ;;  %v2082_v52 = vsel %vm867_vm10, %v4187_v25, -inf  ;;  %v4192_v43 = vsel %vm2039_vm4, %v1709_v28, -1e+30  ;;  %vm4437_vm6 = vcmask 261120  }
 0x8b3   :  { %2074 = vmax.xlane.f32.xlu1 %v2073_v55  ;;  %v1716_v53 = vsel %vm1684_vm1, %v1668_v11, %v1700_v29  ;;  %vm2046_vm0 = vcmp.eq.s32.totalorder %v2027_v42, 1  ;;  %v2085_v14 = vsel %vm867_vm10, %v4192_v43, -inf  ;;  %vm4438_vm12 = vcmask 392192   ;;  %vm4440_vm9 = vmmov %vm4437_vm6 }
 0x8b4   :  { %v4196_v18 = vsel %vm2046_vm0, %v1716_v53, -1e+30  ;;  %vm4439_vm7 = vcmask 523264   ;;  %vm4441_vm11 = vmmov %vm4438_vm12  ;;  %vm2696_vm3 = vcmask 7168  }
 0x8b5   :  { %v2106_v34 = vsel %vm867_vm10, %v4196_v18, -inf  ;;  %vm4442_vm13 = vmmov %vm4439_vm7 }
 0x8b6   :  { %vm4443_vm8 = vmmov %vm4439_vm7 }
 0x8b7   :  { %2077 = vmax.xlane.f32.xlu1 %v2076_v38  ;;  %vm4444_vm2 = vmmov %vm4439_vm7 }
 0x8bb   :  { %2080 = vmax.xlane.f32.xlu1 %v2079_v45 }
 0x8bf   :  { %2083 = vmax.xlane.f32.xlu1 %v2082_v52 }
 0x8c3   :  { %2086 = vmax.xlane.f32.xlu1 %v2085_v14 }
 0x8c7   :  { %2107 = vmax.xlane.f32.xlu1 %v2106_v34 }
 0x924   :  { %v2090_v47 = vpop.xlane.xlu1 %2089  ;;  %v2105_v21 = vpop.xlane.xlu0 %2104 }
 0x925   :  { %v2120_v49 = vsub.f32 %v4047_v1, %v2090_v47  ;;  %v2125_v41 = vsub.f32 %v4043_v33, %v2105_v21 }
 0x927   :  { %v2144_v3 = vmul.f32 1.442695, %v2120_v49  ;;  %v2154_v1 = vmul.f32 1.442695, %v2125_v41 }
 0x928   :  { %v2093_v60 = vpop.xlane.xlu1 %2092  ;;  %v2069_v50 = vpop.xlane.xlu0 %2068 }
 0x929   :  { %v2121_v56 = vsub.f32 %v4057_v35, %v2093_v60  ;;  %3112 = vpow2.f32 %v2144_v3  ;;  %v2113_v7 = vsub.f32 %v4061_v0, %v2069_v50 }
 0x92b   :  { %v2146_v62 = vmul.f32 1.442695, %v2121_v56  ;;  %v2130_v57 = vmul.f32 1.442695, %v2113_v7 }
 0x92c   :  { %v2096_v63 = vpop.xlane.xlu1 %2095  ;;  %v2111_v52 = vpop.xlane.xlu0 %2110 }
 0x92d   :  { %3114 = vpow2.f32 %v2146_v62  ;;  %v2122_v15 = vsub.f32 %v4083_v4, %v2096_v63  ;;  %v2127_v49 = vsub.f32 %v4087_v36, %v2111_v52 }
 0x92f   :  { %v2148_v23 = vmul.f32 1.442695, %v2122_v15  ;;  %v2158_v62 = vmul.f32 1.442695, %v2127_v49 }
 0x930   :  { %v2099_v5 = vpop.xlane.xlu1 %2098 }
 0x931   :  { %3116 = vpow2.f32 %v2148_v23  ;;  %v2123_v16 = vsub.f32 %v4107_v17, %v2099_v5 }
 0x933   :  { %v2150_v44 = vmul.f32 1.442695, %v2123_v16  ;;  %v4206_v35 = vpop.eup %3112 }
 0x934   :  { %v2102_v48 = vpop.xlane.xlu1 %2101  ;;  %v2184_v4 = vsel %vm867_vm10, %v4206_v35, 0.0 }
 0x935   :  { %3118 = vpow2.f32 %v2150_v44  ;;  %v2124_v54 = vsub.f32 %v4128_v19, %v2102_v48  ;;  %2185 = vadd.xlane.f32.xlu1 %v2184_v4 }
 0x936   :  { %3120 = vpow2.f32 %v2154_v1 }
 0x937   :  { %v4211_v33 = vpop.eup %3114  ;;  %v2152_v40 = vmul.f32 1.442695, %v2124_v54 }
 0x938   :  { %v2066_v17 = vpop.xlane.xlu1 %2065  ;;  %v2187_v0 = vsel %vm867_vm10, %v4211_v33, 0.0 }
 0x939   :  { %3122 = vpow2.f32 %v2152_v40  ;;  %v2112_v61 = vsub.f32 %v4142_v9, %v2066_v17  ;;  %2188 = vadd.xlane.f32.xlu0 %v2187_v0 }
 0x93a   :  { %3124 = vpow2.f32 %v2130_v57 }
 0x93b   :  { %v4216_v10 = vpop.eup %3116  ;;  %v2128_v19 = vmul.f32 1.442695, %v2112_v61 }
 0x93c   :  { %v2072_v12 = vpop.xlane.xlu1 %2071  ;;  %v2190_v26 = vsel %vm867_vm10, %v4216_v10, 0.0 }
 0x93d   :  { %3126 = vpow2.f32 %v2128_v19  ;;  %v2114_v46 = vsub.f32 %v4153_v2, %v2072_v12  ;;  %2191 = vadd.xlane.f32.xlu1 %v2190_v26 }
 0x93f   :  { %v4221_v55 = vpop.eup %3118  ;;  %v2132_v22 = vmul.f32 1.442695, %v2114_v46 }
 0x940   :  { %v2075_v59 = vpop.xlane.xlu1 %2074  ;;  %v2193_v9 = vsel %vm867_vm10, %v4221_v55, 0.0  ;;  %v4225_v32 = vpop.eup %3120 }
 0x941   :  { %3128 = vpow2.f32 %v2132_v22  ;;  %v2115_v31 = vsub.f32 %v4162_v58, %v2075_v59  ;;  %2194 = vadd.xlane.f32.xlu0 %v2193_v9  ;;  %v2199_v2 = vsel %vm867_vm10, %v4225_v32, 0.0 }
 0x943   :  { %v4228_v6 = vpop.eup %3122  ;;  %v2134_v27 = vmul.f32 1.442695, %v2115_v31 }
 0x944   :  { %v2078_v38 = vpop.xlane.xlu1 %2077  ;;  %v2196_v8 = vsel %vm867_vm10, %v4228_v6, 0.0  ;;  %v4234_v24 = vpop.eup %3124 }
 0x945   :  { %3130 = vpow2.f32 %v2134_v27  ;;  %v2116_v30 = vsub.f32 %v4171_v37, %v2078_v38  ;;  %2200 = vadd.xlane.f32.xlu0 %v2199_v2  ;;  %2197 = vadd.xlane.f32.xlu1 %v2196_v8  ;;  %v2163_v45 = vsel %vm867_vm10, %v4234_v24, 0.0 }
 0x947   :  { %v4237_v11 = vpop.eup %3126  ;;  %v2136_v58 = vmul.f32 1.442695, %v2116_v30 }
 0x948   :  { %v2081_v20 = vpop.xlane.xlu1 %2080  ;;  %v2160_v28 = vsel %vm867_vm10, %v4237_v11, 0.0 }
 0x949   :  { %3132 = vpow2.f32 %v2136_v58  ;;  %v2117_v29 = vsub.f32 %v4179_v13, %v2081_v20  ;;  %2164 = vadd.xlane.f32.xlu0 %v2163_v45  ;;  %2161 = vadd.xlane.f32.xlu1 %v2160_v28 }
 0x94b   :  { %v4244_v42 = vpop.eup %3128  ;;  %v2138_v37 = vmul.f32 1.442695, %v2117_v29 }
 0x94c   :  { %v2084_v53 = vpop.xlane.xlu1 %2083  ;;  %v2166_v14 = vsel %vm867_vm10, %v4244_v42, 0.0 }
 0x94d   :  { %3134 = vpow2.f32 %v2138_v37  ;;  %v2118_v34 = vsub.f32 %v4187_v25, %v2084_v53  ;;  %2167 = vadd.xlane.f32.xlu1 %v2166_v14 }
 0x94f   :  { %v4249_v47 = vpop.eup %3130  ;;  %v2140_v3 = vmul.f32 1.442695, %v2118_v34 }
 0x950   :  { %v2087_v13 = vpop.xlane.xlu1 %2086  ;;  %v2169_v60 = vsel %vm867_vm10, %v4249_v47, 0.0 }
 0x951   :  { %3136 = vpow2.f32 %v2140_v3  ;;  %v2119_v56 = vsub.f32 %v4192_v43, %v2087_v13  ;;  %2170 = vadd.xlane.f32.xlu0 %v2169_v60 }
 0x953   :  { %v4255_v21 = vpop.eup %3132  ;;  %v2142_v63 = vmul.f32 1.442695, %v2119_v56 }
 0x954   :  { %v2108_v15 = vpop.xlane.xlu1 %2107  ;;  %v2172_v25 = vsel %vm867_vm10, %v4255_v21, 0.0 }
 0x955   :  { %3138 = vpow2.f32 %v2142_v63  ;;  %v2126_v36 = vsub.f32 %v4196_v18, %v2108_v15  ;;  %2173 = vadd.xlane.f32.xlu1 %v2172_v25 }
 0x956   :  { %3140 = vpow2.f32 %v2158_v62 }
 0x957   :  { %v4260_v41 = vpop.eup %3134  ;;  %v2156_v23 = vmul.f32 1.442695, %v2126_v36 }
 0x958   :  { %v2175_v43 = vsel %vm867_vm10, %v4260_v41, 0.0 }
 0x959   :  { %3142 = vpow2.f32 %v2156_v23  ;;  %2176 = vadd.xlane.f32.xlu0 %v2175_v43 }
 0x95b   :  { %v3137_v50 = vpop.eup %3136 }
 0x95c   :  { %v2178_v5 = vsel %vm867_vm10, %v3137_v50, 0.0 }
 0x95d   :  { %2179 = vadd.xlane.f32.xlu1 %v2178_v5 }
 0x95f   :  { %v4265_v16 = vpop.eup %3138 }
 0x960   :  { %v2181_v1 = vsel %vm867_vm10, %v4265_v16, 0.0  ;;  %v4269_v18 = vpop.eup %3140 }
 0x961   :  { %2182 = vadd.xlane.f32.xlu0 %v2181_v1  ;;  %v2205_v44 = vsel %vm867_vm10, %v4269_v18, 0.0 }
 0x963   :  { %v4271_v7 = vpop.eup %3142 }
 0x964   :  { %v2202_v48 = vsel %vm867_vm10, %v4271_v7, 0.0  ;;  %vm4435_vm10 = vcmask 130048  }
 0x965   :  { %2206 = vadd.xlane.f32.xlu0 %v2205_v44  ;;  %2203 = vadd.xlane.f32.xlu1 %v2202_v48  ;;  %vm4436_vm5 = vmmov %vm4435_vm10 }
 0x966   :  { %vm4445_vm14 = vmmov %vm4436_vm5 }
 0x967   :  { %vm4446_vm15 = vmmov %vm4436_vm5 }
 0x9c2   :  { %v2186_v54 = vpop.xlane.xlu1 %2185 }
 0x9c6   :  { %v2189_v4 = vpop.xlane.xlu0 %2188 }
 0x9c7   :  { %3144 = vrcp.f32 %v2189_v4 }
 0x9ca   :  { %v2192_v57 = vpop.xlane.xlu1 %2191 }
 0x9cb   :  { %3146 = vrcp.f32 %v2192_v57 }
 0x9ce   :  { %v2195_v40 = vpop.xlane.xlu0 %2194 }
 0x9d1   :  { %v3145_v9 = vpop.eup %3144 }
 0x9d2   :  { %v2198_v17 = vpop.xlane.xlu1 %2197  ;;  %v2201_v0 = vpop.xlane.xlu0 %2200 }
 0x9d5   :  { %v3147_v31 = vpop.eup %3146 }
 0x9d6   :  { %v2162_v61 = vpop.xlane.xlu1 %2161  ;;  %v2165_v19 = vpop.xlane.xlu0 %2164  ;;  %v2234_v56 = vmul.f32 %v3147_v31, %v4216_v10 }
 0x9da   :  { %v2168_v12 = vpop.xlane.xlu1 %2167 }
 0x9de   :  { %v2171_v26 = vpop.xlane.xlu0 %2170 }
 0x9df   :  { %3148 = vrcp.f32 %v2171_v26 }
 0x9e0   :  { %3150 = vrcp.f32 %v2165_v19 }
 0x9e1   :  { %3152 = vrcp.f32 %v2168_v12 }
 0x9e2   :  { %v2174_v46 = vpop.xlane.xlu1 %2173  ;;  %3154 = vrcp.f32 %v2195_v40 }
 0x9e3   :  { %3156 = vrcp.f32 %v2162_v61 }
 0x9e4   :  { %3158 = vrcp.f32 %v2174_v46 }
 0x9e6   :  { %v2177_v22 = vpop.xlane.xlu0 %2176 }
 0x9e9   :  { %v3149_v38 = vpop.eup %3148 }
 0x9ea   :  { %v2180_v59 = vpop.xlane.xlu1 %2179  ;;  %v3151_v2 = vpop.eup %3150  ;;  %v2227_v58 = vmul.f32 %v3149_v38, %v4249_v47  ;;  %v2233_v47 = vmul.f32 %v3145_v9, %v4211_v33 }
 0x9eb   :  { %3160 = vrcp.f32 %v2180_v59  ;;  %v3153_v8 = vpop.eup %3152  ;;  %v2225_v37 = vmul.f32 %v3151_v2, %v4234_v24 }
 0x9ec   :  { %3162 = vrcp.f32 %v2186_v54  ;;  %v3155_v30 = vpop.eup %3154  ;;  %v2226_v52 = vmul.f32 %v3153_v8, %v4244_v42 }
 0x9ed   :  { %3164 = vrcp.f32 %v2177_v22  ;;  %v3157_v28 = vpop.eup %3156  ;;  %v2235_v14 = vmul.f32 %v3155_v30, %v4221_v55  ;;  %v2248_v3 = vcombine.low %v2225_v37, %v2227_v58  ;;  %v2505_v37 = vld [vmem:[#allocation2 + $0x108] sm:$0xff] }
 0x9ee   :  { %v2183_v27 = vpop.xlane.xlu0 %2182  ;;  %v3159_v29 = vpop.eup %3158  ;;  %v2224_v49 = vmul.f32 %v3157_v28, %v4237_v11  ;;  %v2504_v28 = vld [vmem:[#allocation2 + $0x100] sm:$0xff] }
 0x9ef   :  { %3166 = vrcp.f32 %v2183_v27  ;;  %v2228_v63 = vmul.f32 %v3159_v29, %v4255_v21  ;;  %v2316_v15 = vcombine.low %v2233_v47, %v2235_v14  ;;  %v2255_v23 = vrot.slane %v2248_v3, %v3778_v39 }
 0x9f0   :  { %3168 = vrcp.f32 %v2201_v0  ;;  %v2240_v62 = vcombine.low %v2224_v49, %v2226_v52  ;;  %v3021_v14 = vpack.c.bf16 %v2505_v37, %v2504_v28  ;;  %v2507_v49 = vld [vmem:[#allocation2 + $0x118] sm:$0xff] }
 0x9f1   :  { %3170 = vrcp.f32 %v2198_v17  ;;  %v2323_v1 = vrot.slane %v2316_v15, %v3778_v39 }
 0x9f2   :  { %v2207_v20 = vpop.xlane.xlu0 %2206  ;;  %v2204_v45 = vpop.xlane.xlu1 %2203  ;;  %v2247_v10 = vrot.slane %v2240_v62, %v3778_v39 }
 0x9f3   :  { %3172 = vrcp.f32 %v2207_v20  ;;  %v2502_v20 = vld [vmem:[#allocation2 + $0xf0] sm:$0xff] }
 0x9f4   :  { %3174 = vrcp.f32 %v2204_v45  ;;  %v2273_v38 = vcombine.high %v2247_v10, %v2255_v23  ;;  %v2503_v45 = vld [vmem:[#allocation2 + $0xf8] sm:$0xff] }
 0x9f5   :  { %v3161_v53 = vpop.eup %3160  ;;  %v3017_v29 = vpack.c.bf16 %v2503_v45, %v2502_v20 }
 0x9f6   :  { %v3163_v34 = vpop.eup %3162  ;;  %v2230_v13 = vmul.f32 %v3161_v53, %v3137_v50 }
 0x9f7   :  { %v3165_v60 = vpop.eup %3164  ;;  %v2232_v42 = vmul.f32 %v3163_v34, %v4206_v35  ;;  %3018 = vmatprep.subr.bf16.mxu1 %v3017_v29  ;;  %v2506_v34 = vld [vmem:[#allocation2 + $0x110] sm:$0xff] }
 0x9f8   :  { %v2229_v55 = vmul.f32 %v3165_v60, %v4260_v41  ;;  %v2256_v36 = vcombine.low %v2228_v63, %v2230_v13  ;;  %3020 = vmatpush3.bf16.msra.mxu1 %v3017_v29  ;;  %v3025_v13 = vpack.c.bf16 %v2507_v49, %v2506_v34 }
 0x9f9   :  { %v3167_v24 = vpop.eup %3166  ;;  %v2308_v50 = vcombine.low %v2232_v42, %v2234_v56  ;;  %3022 = vmatprep.subr.bf16.mxu1 %v3021_v14 }
 0x9fa   :  { %v3169_v25 = vpop.eup %3168  ;;  %v2231_v11 = vmul.f32 %v3167_v24, %v4265_v16  ;;  %v2263_v41 = vrot.slane %v2256_v36, %v3778_v39  ;;  %v2272_v16 = vcombine.low %v2247_v10, %v2255_v23  ;;  %v2508_v23 = vld [vmem:[#allocation2 + $0x120] sm:$0xff] }
 0x9fb   :  { %v3171_v43 = vpop.eup %3170  ;;  %v2237_v21 = vmul.f32 %v3169_v25, %v4225_v32  ;;  %v2315_v40 = vrot.slane %v2308_v50, %v3778_v39 }
 0x9fc   :  { %v2264_v33 = vcombine.low %v2229_v55, %v2231_v11  ;;  %v2236_v54 = vmul.f32 %v3171_v43, %v4228_v6  ;;  %v2280_v19 = vrot.slane %v2272_v16, %v3795_v51  ;;  %3024 = vmatpush3.bf16.msra.mxu1 %v3021_v14  ;;  %v2509_v43 = vld [vmem:[#allocation2 + $0x128] sm:$0xff] }
 0x9fd   :  { %v3173_v5 = vpop.eup %3172  ;;  %v2341_v61 = vcombine.high %v2315_v40, %v2323_v1  ;;  %v2340_v26 = vcombine.low %v2315_v40, %v2323_v1  ;;  %3026 = vmatprep.subr.bf16.mxu1 %v3025_v13  ;;  %v3029_v50 = vpack.c.bf16 %v2509_v43, %v2508_v23 }
 0x9fe   :  { %v3175_v35 = vpop.eup %3174  ;;  %v2239_v44 = vmul.f32 %v3173_v5, %v4269_v18  ;;  %v2271_v48 = vrot.slane %v2264_v33, %v3778_v39  ;;  %v2718_v33 = vld [vmem:[#allocation2 + $0xe8] ss:$0 sm:$0xff] }
 0x9ff   :  { %v2238_v4 = vmul.f32 %v3175_v35, %v4271_v7  ;;  %v2355_v7 = vrot.slane %v2341_v61, %v3795_v51  ;;  %v2348_v31 = vrot.slane %v2340_v26, %v3795_v51 }
 0xa00   :  { %v2332_v57 = vcombine.low %v2237_v21, %v2239_v44  ;;  %v2288_v17 = vcombine.low %v2263_v41, %v2271_v48  ;;  %v2289_v59 = vcombine.high %v2263_v41, %v2271_v48  ;;  %3028 = vmatpush3.bf16.msra.mxu1 %v3025_v13  ;;  %v2596_v41 = vld [vmem:[#allocation2 + $0x138] sm:$0xff]  ;;  %v2597_v48 = vld [vmem:[#allocation2 + $0x140] sm:$0xff] }
 0xa01   :  { %v2324_v0 = vcombine.low %v2236_v54, %v2238_v4  ;;  %3030 = vmatprep.subr.bf16.mxu1 %v3029_v50  ;;  %v3033_v16 = vpack.c.bf16 %v2597_v48, %v2596_v41  ;;  %v2721_v54 = vld [vmem:[#allocation2 + $0x130] ss:$0 sm:$0xff] }
 0xa02   :  { %v2339_v32 = vrot.slane %v2332_v57, %v3778_v39  ;;  %v2296_v18 = vrot.slane %v2288_v17, %v3795_v51  ;;  %v2303_v30 = vrot.slane %v2289_v59, %v3795_v51 }
 0xa03   :  { %v2331_v12 = vrot.slane %v2324_v0, %v3778_v39  ;;  %v2287_v39 = vrot.slane %v2273_v38, %v3795_v51  ;;  %3034 = vmatprep.subr.bf16.mxu0 %v3033_v16  ;;  %v2724_v0 = vld [vmem:[#allocation2 + $0x148] ss:$0 sm:$0xff] }
 0xa04   :  { %v2304_v46 = vcombine.low %v2280_v19, %v2296_v18  ;;  %v2305_v52 = vcombine.high %v2280_v19, %v2296_v18  ;;  %3032 = vmatpush3.bf16.msra.mxu1 %v3029_v50 }
 0xa05   :  { %v2357_v22 = vcombine.high %v2331_v12, %v2339_v32  ;;  %v2356_v6 = vcombine.low %v2331_v12, %v2339_v32  ;;  %v2307_v53 = vcombine.high %v2287_v39, %v2303_v30  ;;  %v2306_v3 = vcombine.low %v2287_v39, %v2303_v30 }
 0xa07   :  { %v2371_v9 = vrot.slane %v2357_v22, %v3795_v51  ;;  %v2364_v27 = vrot.slane %v2356_v6, %v3795_v51 }
 0xa09   :  { %v2374_v2 = vcombine.low %v2355_v7, %v2371_v9  ;;  %v2373_v8 = vcombine.high %v2348_v31, %v2364_v27  ;;  %v2372_v58 = vcombine.low %v2348_v31, %v2364_v27  ;;  %v2375_v51 = vcombine.high %v2355_v7, %v2371_v9 }
 0xa0b   :  { %2388 = vrot.lane.b32.xlu1 %v2374_v2, %s3223_s0  ;;  %2380 = vrot.lane.b32.xlu0 %v2373_v8, %s3224_s9 }
 0xa0f   :  { %2378 = vrot.lane.b32.xlu1 %v2305_v52, %s3224_s9  ;;  %2394 = vrot.lane.b32.xlu0 %v2307_v53, %s3225_s10 }
 0xa13   :  { %2386 = vrot.lane.b32.xlu1 %v2306_v3, %s3223_s0 }
 0xa17   :  { %2396 = vrot.lane.b32.xlu1 %v2375_v51, %s3225_s10 }
 0xa7d   :  { %v2389_v60 = vpop.permute.xlu1 %2388  ;;  %v2381_v47 = vpop.permute.xlu0 %2380 }
 0xa7e   :  { %v2401_v24 = vsel %vm4436_vm5, %v2372_v58, %v2381_v47 }
 0xa7f   :  { %v2403_v36 = vsel %vm4440_vm9, %v2401_v24, %v2389_v60 }
 0xa81   :  { %v2379_v56 = vpop.permute.xlu1 %2378  ;;  %v2395_v42 = vpop.permute.xlu0 %2394 }
 0xa82   :  { %v2400_v62 = vsel %vm4435_vm10, %v2304_v46, %v2379_v56 }
 0xa85   :  { %v2387_v63 = vpop.permute.xlu1 %2386 }
 0xa86   :  { %v2402_v15 = vsel %vm4437_vm6, %v2400_v62, %v2387_v63 }
 0xa87   :  { %v2404_v25 = vsel %vm4438_vm12, %v2402_v15, %v2395_v42 }
 0xa88   :  { %2904 = vmatprep.mubr.msk.f32.mxu0 %vm4439_vm7, %v2404_v25 }
 0xa89   :  { %v2397_v55 = vpop.permute.xlu1 %2396 }
 0xa8a   :  { %v2405_v11 = vsel %vm4441_vm11, %v2403_v36, %v2397_v55 }
 0xa8b   :  { %2905 = vmatmul.mubr.msk.f32.vlgmr.msra.gmra.mrb[6].mxu0 %vm4442_vm13, %v2405_v11 }
 0xa8c   :  { %3036 = vmatpush3.bf16.msra.mxu0 %v3033_v16 }
 0xb5e   :  { %v2906_v10 = vpop.f32.mrb[6].mxu0 }
 0xb5f   :  { %v2497_v5 = vadd.f32 %v2906_v10, %v2718_v33  ;;  %v2491_v21 = vpop.f32.mrb[7].mxu0 }
 0xb60   :  { %v2492_v1 = vadd.f32 %v2718_v33, %v2491_v21 }
 0xb61   :  { %v2501_v44 = vmax.f32 %v2497_v5, 0.0 }
 0xb62   :  { %v2500_v35 = vmax.f32 %v2492_v1, 0.0 }
 0xb64   :  { %2923 = vmatprep.mubr.msk.f32.mxu1 %vm4443_vm8, %v2500_v35 }
 0xb65   :  { %2924 = vmatmul.mubr.msk.f32.vlgmr.msra.gmra.mrb[6].mxu1 %vm4444_vm2, %v2501_v44 }
 0xc38   :  { %v2925_v4 = vpop.f32.mrb[6].mxu1 }
 0xc39   :  { %v2587_v57 = vpop.f32.mrb[7].mxu1  ;;  %v2593_v17 = vadd.f32 %v2925_v4, %v2721_v54 }
 0xc3a   :  { %v2588_v40 = vadd.f32 %v2721_v54, %v2587_v57 }
 0xc3c   :  { %2930 = vmatprep.mubr.msk.f32.mxu0 %vm4445_vm14, %v2588_v40 }
 0xc3d   :  { %2931 = vmatmul.mubr.msk.f32.vlgmr.msra.gmra.mrb[8].mxu0 %vm4446_vm15, %v2593_v17 }
 0xd10   :  { %v2932_v32 = vpop.f32.mrb[8].mxu0 }
 0xd11   :  { %v2681_v61 = vadd.f32 %v2932_v32, %v2724_v0  ;;  %v2675_v19 = vpop.f32.mrb[9].mxu0 }
 0xd12   :  { %v2676_v18 = vadd.f32 %v2724_v0, %v2675_v19 }
 0xd13   :  { %v2728_v12 = vmul.f32 -1.442695, %v2681_v61 }
 0xd14   :  { %v2727_v26 = vmul.f32 -1.442695, %v2676_v18 }
 0xd15   :  { %3176 = vpow2.f32 %v2728_v12 }
 0xd16   :  { %3178 = vpow2.f32 %v2727_v26 }
 0xd1f   :  { %v3177_v46 = vpop.eup %3176 }
 0xd20   :  { %v3179_v22 = vpop.eup %3178  ;;  %v2691_v6 = vadd.f32 1.0, %v3177_v46 }
 0xd21   :  { %v2690_v59 = vadd.f32 1.0, %v3179_v22 }
 0xd22   :  { %3180 = vrcp.f32 %v2691_v6 }
 0xd23   :  { %3182 = vrcp.f32 %v2690_v59 }
 0xd2c   :  { %v3181_v7 = vpop.eup %3180 }
 0xd2d   :  { %v3183_v9 = vpop.eup %3182  ;;  %2698 = vst.msk [vmem:[%s4336_s4 + $0x8] sm:$0xff] %vm2696_vm3, %v3181_v7 }
 0xd2e   :  { %2697 = vst.msk [vmem:[%s4336_s4] sm:$0xff] %vm2696_vm3, %v3183_v9 }
 0xd2f   :  { %2703 = vsyncpa [#allocation3], 1 }

</bundles_post_ra>
